<compile_context>
chip_gen: v7x
topology: tpu7x:2x2x1
jax: 0.10.0
libtpu: 0.0.40
codegen_flags: <defaults>
</compile_context>

<pallas_src>
import functools

import jax
import jax.numpy as jnp
from jax import lax
from jax.experimental import pallas as pl
from jax.experimental.pallas import tpu as pltpu


def _layernorm(x, g, b, eps=1e-5):
    mu = jnp.mean(x, axis=-1, keepdims=True)
    xc = x - mu
    var = jnp.mean(xc * xc, axis=-1, keepdims=True)
    return xc * lax.rsqrt(var + eps) * g + b


def _edge_attention_kernel(
    x_ref, mask_ref,
    wqkv_ref, bqkv_ref,
    g1_ref, be1_ref,
    w1_ref, b1_ref, w2_ref, b2_ref,
    g2_ref, be2_ref,
    out_ref,
    *, num_heads: int, scale: float, approx_softmax: bool,
):
    Bt, E, D = x_ref.shape
    H = num_heads
    hd = D // H
    cdt = wqkv_ref.dtype                      # matmul operand dtype (bf16 or f32)
    M = Bt * E

    x = x_ref[...].reshape(M, D)              # f32 residual / LayerNorm path

    # --- fused QKV projection: one (M,D)x(D,3D) MXU matmul, f32 accumulation ---
    qkv = jnp.dot(x.astype(cdt), wqkv_ref[...],
                  preferred_element_type=jnp.float32)
    qkv = qkv + bqkv_ref[...]
    q = (qkv[:, :D] * jnp.float32(scale)).astype(cdt)   # 1/sqrt(hd) in f32
    k = qkv[:, D:2 * D].astype(cdt)
    v = qkv[:, 2 * D:].astype(cdt)

    masked = mask_ref[...] != 0               # int8 -> bool, (Bt, E, E)
    neg = jnp.float32(-3e38)                  # finite sentinel: no inf-inf NaN

    # Static per-head loop (see header note on why heads are not batch dims).
    head_outs = []
    for h in range(H):
        lo = h * hd
        qh = q[:, lo:lo + hd].reshape(Bt, E, hd)
        kh = k[:, lo:lo + hd].reshape(Bt, E, hd)
        vh = v[:, lo:lo + hd].reshape(Bt, E, hd)
        s = jnp.einsum('bqd,bkd->bqk', qh, kh,
                       preferred_element_type=jnp.float32)
        s = jnp.where(masked, neg, s)
        m = jnp.max(s, axis=-1, keepdims=True)
        p = jnp.exp(s - m)
        denom = jnp.sum(p, axis=-1, keepdims=True)
        attn = p * pl.reciprocal(denom, approx=approx_softmax)
        # self.dropout(attn) and the residual dropouts are identity (eval mode).
        oh = jnp.einsum('bqk,bkd->bqd', attn.astype(cdt), vh,
                        preferred_element_type=jnp.float32)
        head_outs.append(oh)
    attn_out = head_outs[0] if H == 1 else jnp.concatenate(head_outs, axis=-1)
    attn_out = attn_out.reshape(M, D)

    # --- residual + LayerNorm 1 ---
    x1 = _layernorm(x + attn_out, g1_ref[...], be1_ref[...])

    # --- FFN: linear2(relu(linear1(x1)))  (dropouts identity in eval) ---
    h1 = jnp.dot(x1.astype(cdt), w1_ref[...],
                 preferred_element_type=jnp.float32) + b1_ref[...]
    h1 = jnp.maximum(h1, 0.0)   # relu; TODO(synk): gelu / leakyrelu / SMU paths
    ff = jnp.dot(h1.astype(cdt), w2_ref[...],
                 preferred_element_type=jnp.float32) + b2_ref[...]

    # --- residual + LayerNorm 2 ---
    x2 = _layernorm(x1 + ff, g2_ref[...], be2_ref[...])
    out_ref[...] = x2.reshape(Bt, E, D).astype(out_ref.dtype)


def edge_attention_pallas(edge_x, edge_mask, params, *, num_heads=1,
                          compute_dtype=jnp.bfloat16, out_dtype=None,
                          approx_softmax=False, block_batch=None):
    """edge_x: (bsz, E, D) f32; edge_mask: (bsz, E, E) bool (True = masked)."""
    bsz, E, D = edge_x.shape
    assert D % num_heads == 0
    hd = D // num_heads
    scale = float(hd) ** -0.5
    cdt = jnp.dtype(compute_dtype)
    odt = jnp.dtype(out_dtype) if out_dtype is not None else edge_x.dtype

    # nn.Linear stores (out, in); pre-transpose to (in, out) for x @ W.
    wqkv = params['in_proj_weight1'].astype(cdt)                     # (D, 3D)
    bqkv = params['in_proj_bias1'].astype(jnp.float32)[None, :]
    w1 = params['linear1_w'].T.astype(cdt)
    b1 = params['linear1_b'].astype(jnp.float32)[None, :]
    w2 = params['linear2_w'].T.astype(cdt)
    b2 = params['linear2_b'].astype(jnp.float32)[None, :]
    g1 = params['norm1_w'].astype(jnp.float32)[None, :]
    be1 = params['norm1_b'].astype(jnp.float32)[None, :]
    g2 = params['norm2_w'].astype(jnp.float32)[None, :]
    be2 = params['norm2_b'].astype(jnp.float32)[None, :]

    # --- pad edge_len to a sublane multiple (8); padded KV columns are masked.
    E_pad = ((E + 7) // 8) * 8
    mask_i8 = edge_mask.astype(jnp.int8)          # 4x less HBM/VMEM than f32
    if E_pad != E:
        pe = E_pad - E
        edge_x = jnp.pad(edge_x, ((0, 0), (0, pe), (0, 0)))
        mask_i8 = jnp.pad(mask_i8, ((0, 0), (0, 0), (0, pe)), constant_values=1)
        mask_i8 = jnp.pad(mask_i8, ((0, 0), (0, pe), (0, 0)), constant_values=0)

    weights = [wqkv, bqkv, g1, be1, w1, b1, w2, b2, g2, be2]
    weight_bytes = 2 * sum(int(w.size) * w.dtype.itemsize for w in weights)
    cbytes = cdt.itemsize
    obytes = odt.itemsize

    # --- VMEM model: double-buffered I/O blocks + in-kernel intermediates. ---
    try:
        phys_vmem = int(getattr(pltpu.get_tpu_info(), 'vmem_capacity_bytes',
                                64 << 20))
    except Exception:
        phys_vmem = 64 << 20      # conservative fallback = v7x per-TC VMEM

    def per_step_bytes(bt):
        m = bt * E_pad
        io = 2 * (m * D * 4                      # x block (f32), double-buffered
                  + bt * E_pad * E_pad           # int8 mask block
                  + m * D * obytes)              # output block
        inter = (3 * m * D * 4                   # qkv f32
                 + 3 * m * D * cbytes            # q/k/v compute-dtype copies
                 + 4 * bt * E_pad * E_pad * 4    # live score / exp / attn (+slack)
                 + 6 * m * D * 4)                # head outs, x1, h1, ff, x2, slack
        return io + inter

    budget = max(int(phys_vmem * 0.7) - weight_bytes - (2 << 20), 4 << 20)

    # --- Bt: target M = Bt*E_pad ~ 2048 rows, keep >= 2 grid steps for v7x
    #     dual-TensorCore sharding, back off while VMEM model exceeds budget.
    if block_batch is None:
        bt = max(1, -(-2048 // E_pad))
        bt = min(bt, max(bsz, 1))
        if bsz >= 2:
            bt = min(bt, -(-bsz // 2))
        while bt > 1 and per_step_bytes(bt) > budget:
            bt -= 1
    else:
        bt = int(block_batch)
    # TODO(synk): once bt == 1 no longer fits (very large edge_len), add a
    # flash-style KV-chunk "arbitrary" grid axis over the (E, E) scores.

    bsz_pad = -(-bsz // bt) * bt
    if bsz_pad != bsz:
        pad = bsz_pad - bsz
        edge_x = jnp.pad(edge_x, ((0, pad), (0, 0), (0, 0)))
        mask_i8 = jnp.pad(mask_i8, ((0, pad), (0, 0), (0, 0)))

    vmem_limit = per_step_bytes(bt) + weight_bytes + (4 << 20)
    vmem_limit = int(min(max(vmem_limit, 32 << 20), int(phys_vmem * 0.9)))

    def full_spec(a):
        nd = a.ndim
        # Constant index_map: weights stay resident, no re-DMA across steps.
        # TODO(synk): pipeline_mode=pl.Buffered(1) to single-buffer them.
        return pl.BlockSpec(a.shape, lambda b, _nd=nd: (0,) * _nd)

    kernel = functools.partial(_edge_attention_kernel, num_heads=num_heads,
                               scale=scale,
                               approx_softmax=bool(approx_softmax))

    out = pl.pallas_call(
        kernel,
        out_shape=jax.ShapeDtypeStruct((bsz_pad, E_pad, D), odt),
        grid_spec=pltpu.PrefetchScalarGridSpec(
            num_scalar_prefetch=0,
            grid=(bsz_pad // bt,),
            in_specs=[
                pl.BlockSpec((bt, E_pad, D), lambda b: (b, 0, 0)),       # edge_x
                pl.BlockSpec((bt, E_pad, E_pad), lambda b: (b, 0, 0)),   # mask i8
            ] + [full_spec(w) for w in weights],
            out_specs=pl.BlockSpec((bt, E_pad, D), lambda b: (b, 0, 0)),
        ),
        compiler_params=pltpu.CompilerParams(
            dimension_semantics=("parallel",),
            vmem_limit_bytes=vmem_limit),
    )(edge_x, mask_i8, *weights)
    return out[:bsz, :E]


def edge_attention_reference(edge_x, edge_mask, params, *, num_heads=1):
    """Pure-JAX reference mirroring the PyTorch forward (eval mode), full f32."""
    bsz, E, D = edge_x.shape
    hd = D // num_heads
    scaling = float(hd) ** -0.5
    hi = lax.Precision.HIGHEST
    qkv = jnp.einsum('bed,df->bef', edge_x, params['in_proj_weight1'],
                     precision=hi) + params['in_proj_bias1']
    q, k, v = jnp.split(qkv, 3, axis=-1)
    q = q.reshape(bsz, E, num_heads, hd)
    k = k.reshape(bsz, E, num_heads, hd)
    v = v.reshape(bsz, E, num_heads, hd)
    scores = jnp.einsum('bqhd,bkhd->bhqk', q, k, precision=hi) * scaling
    scores = jnp.where(edge_mask[:, None, :, :], -jnp.inf, scores)
    attn = jax.nn.softmax(scores, axis=-1)
    out = jnp.einsum('bhqk,bkhd->bqhd', attn, v, precision=hi).reshape(bsz, E, D)

    def layernorm(x, g, b):
        mu = jnp.mean(x, axis=-1, keepdims=True)
        var = jnp.mean((x - mu) ** 2, axis=-1, keepdims=True)
        return (x - mu) / jnp.sqrt(var + 1e-5) * g + b

    x1 = layernorm(edge_x + out, params['norm1_w'], params['norm1_b'])
    h = jnp.maximum(jnp.einsum('bed,fd->bef', x1, params['linear1_w'],
                               precision=hi) + params['linear1_b'], 0.0)
    ff = jnp.einsum('bed,fd->bef', h, params['linear2_w'],
                    precision=hi) + params['linear2_b']
    x2 = layernorm(x1 + ff, params['norm2_w'], params['norm2_b'])
    return x2


def make_params(key, d_model):
    ks = jax.random.split(key, 4)
    limit = (6.0 / (d_model + 3 * d_model)) ** 0.5          # xavier_uniform_
    in_proj_w = jax.random.uniform(ks[0], (d_model, 3 * d_model),
                                   minval=-limit, maxval=limit, dtype=jnp.float32)
    in_proj_b = jnp.zeros((3 * d_model,), jnp.float32)      # init.constant_(0.)
    lim = (1.0 / d_model) ** 0.5
    lin1_w = jax.random.uniform(ks[1], (d_model, d_model),
                                minval=-lim, maxval=lim, dtype=jnp.float32)
    lin1_b = jax.random.uniform(ks[2], (d_model,),
                                minval=-lim, maxval=lim, dtype=jnp.float32)
    lin2_w = jax.random.uniform(ks[3], (d_model, d_model),
                                minval=-lim, maxval=lim, dtype=jnp.float32)
    lin2_b = jnp.zeros((d_model,), jnp.float32)
    return {
        'in_proj_weight1': in_proj_w, 'in_proj_bias1': in_proj_b,
        'linear1_w': lin1_w, 'linear1_b': lin1_b,
        'linear2_w': lin2_w, 'linear2_b': lin2_b,
        'norm1_w': jnp.ones((d_model,), jnp.float32),
        'norm1_b': jnp.zeros((d_model,), jnp.float32),
        'norm2_w': jnp.ones((d_model,), jnp.float32),
        'norm2_b': jnp.zeros((d_model,), jnp.float32),
    }


if __name__ == "__main__":
    def run_case(bsz, edge_len, d_model, num_heads, key):
        kx, km, kp = jax.random.split(key, 3)
        edge_x = jax.random.normal(kx, (bsz, edge_len, d_model), dtype=jnp.float32)
        edge_mask = jax.random.bernoulli(km, 0.3, (bsz, edge_len, edge_len))
        # Keep the diagonal unmasked (fully masked rows would be NaN in PyTorch).
        eye = jnp.eye(edge_len, dtype=bool)[None, :, :]
        edge_mask = jnp.where(eye, False, edge_mask)
        params = make_params(kp, d_model)
        ref = edge_attention_reference(edge_x, edge_mask, params,
                                       num_heads=num_heads)

        # Strict semantic check: f32 matmul operands, exact softmax reciprocal.
        out_f32 = edge_attention_pallas(edge_x, edge_mask, params,
                                        num_heads=num_heads,
                                        compute_dtype=jnp.float32)
        out_f32 = jax.block_until_ready(out_f32)
        assert out_f32.shape == ref.shape
        err = float(jnp.max(jnp.abs(out_f32 - ref)))
        assert err < 2e-3, err

        # Fast path: bf16 MXU operands, bf16 output stream, approx reciprocal.
        out_bf = edge_attention_pallas(edge_x, edge_mask, params,
                                       num_heads=num_heads,
                                       compute_dtype=jnp.bfloat16,
                                       out_dtype=jnp.bfloat16,
                                       approx_softmax=True)
        out_bf = jax.block_until_ready(out_bf)
        assert out_bf.shape == ref.shape
        err_bf = float(jnp.max(jnp.abs(out_bf.astype(jnp.float32) - ref)))
        assert err_bf < 1.5e-1, err_bf

    key = jax.random.PRNGKey(0)
    k1, k2 = jax.random.split(key)
    # Module default d_model=128 (lane-dense output), multi-head, bsz=2 -> 2 grid steps.
    run_case(bsz=2, edge_len=8, d_model=128, num_heads=4, key=k1)
    # Odd edge_len (10 -> padded to 16) + odd bsz exercises both padding paths.
    run_case(bsz=3, edge_len=10, d_model=128, num_heads=2, key=k2)
    print("KERNEL_OK")
</pallas_src>

<mosaic_0001>
module attributes {stable_mosaic.version = 11 : i64} {
  func.func @_edge_attention_kernel(%arg0: i32, %arg1: memref<1x8x128xf32, #tpu.memory_space<vmem>>, %arg2: memref<1x8x8xi8, #tpu.memory_space<vmem>>, %arg3: memref<128x384xf32, #tpu.memory_space<vmem>>, %arg4: memref<1x384xf32, #tpu.memory_space<vmem>>, %arg5: memref<1x128xf32, #tpu.memory_space<vmem>>, %arg6: memref<1x128xf32, #tpu.memory_space<vmem>>, %arg7: memref<128x128xf32, #tpu.memory_space<vmem>>, %arg8: memref<1x128xf32, #tpu.memory_space<vmem>>, %arg9: memref<128x128xf32, #tpu.memory_space<vmem>>, %arg10: memref<1x128xf32, #tpu.memory_space<vmem>>, %arg11: memref<1x128xf32, #tpu.memory_space<vmem>>, %arg12: memref<1x128xf32, #tpu.memory_space<vmem>>, %arg13: memref<1x8x128xf32, #tpu.memory_space<vmem>>) attributes {dimension_semantics = [#tpu.dimension_semantics<parallel>], iteration_bounds = array<i64: 2>, scalar_prefetch = 0 : i64, scratch_operands = 0 : i64, tpu.core_type = #tpu.core_type<tc>, window_params = [{transform_indices = @transform_0, window_bounds = array<i64: 1, 8, 128>}, {transform_indices = @transform_1, window_bounds = array<i64: 1, 8, 8>}, {pipeline_mode = #tpu.pipeline_mode<synchronous>, transform_indices = @transform_2, window_bounds = array<i64: 128, 384>}, {pipeline_mode = #tpu.pipeline_mode<synchronous>, transform_indices = @transform_3, window_bounds = array<i64: 1, 384>}, {pipeline_mode = #tpu.pipeline_mode<synchronous>, transform_indices = @transform_4, window_bounds = array<i64: 1, 128>}, {pipeline_mode = #tpu.pipeline_mode<synchronous>, transform_indices = @transform_5, window_bounds = array<i64: 1, 128>}, {pipeline_mode = #tpu.pipeline_mode<synchronous>, transform_indices = @transform_6, window_bounds = array<i64: 128, 128>}, {pipeline_mode = #tpu.pipeline_mode<synchronous>, transform_indices = @transform_7, window_bounds = array<i64: 1, 128>}, {pipeline_mode = #tpu.pipeline_mode<synchronous>, transform_indices = @transform_8, window_bounds = array<i64: 128, 128>}, {pipeline_mode = #tpu.pipeline_mode<synchronous>, transform_indices = @transform_9, window_bounds = array<i64: 1, 128>}, {pipeline_mode = #tpu.pipeline_mode<synchronous>, transform_indices = @transform_10, window_bounds = array<i64: 1, 128>}, {pipeline_mode = #tpu.pipeline_mode<synchronous>, transform_indices = @transform_11, window_bounds = array<i64: 1, 128>}, {transform_indices = @transform_12, window_bounds = array<i64: 1, 8, 128>}]} {
    %c0 = arith.constant 0 : index
    %c0_0 = arith.constant 0 : index
    %c0_1 = arith.constant 0 : index
    %0 = vector.load %arg1[%c0, %c0_0, %c0_1] : memref<1x8x128xf32, #tpu.memory_space<vmem>>, vector<1x8x128xf32>
    %1 = vector.shape_cast %0 : vector<1x8x128xf32> to vector<8x128xf32>
    %c0_2 = arith.constant 0 : index
    %c0_3 = arith.constant 0 : index
    %2 = vector.load %arg3[%c0_2, %c0_3] : memref<128x384xf32, #tpu.memory_space<vmem>>, vector<128x384xf32>
    %cst = arith.constant dense<0.000000e+00> : vector<8x384xf32>
    %3 = tpu.matmul %1, %2, %cst {dimension_numbers = #tpu.dot_dimension_numbers<[1], [0], [0], [1], [0, 0, 1, 1], [], []>} : vector<8x128xf32>, vector<128x384xf32>, vector<8x384xf32> -> vector<8x384xf32>
    %c0_4 = arith.constant 0 : index
    %c0_5 = arith.constant 0 : index
    %4 = vector.load %arg4[%c0_4, %c0_5] : memref<1x384xf32, #tpu.memory_space<vmem>>, vector<1x384xf32>
    %5 = vector.broadcast %4 : vector<1x384xf32> to vector<8x384xf32>
    %6 = arith.addf %3, %5 : vector<8x384xf32>
    %7 = vector.extract_strided_slice %6 {offsets = [0, 0], sizes = [8, 128], strides = [1, 1]} : vector<8x384xf32> to vector<8x128xf32>
    %cst_6 = arith.constant 0.176776692 : f32
    %8 = vector.broadcast %cst_6 : f32 to vector<8x128xf32>
    %9 = arith.mulf %7, %8 : vector<8x128xf32>
    %10 = vector.extract_strided_slice %6 {offsets = [0, 128], sizes = [8, 128], strides = [1, 1]} : vector<8x384xf32> to vector<8x128xf32>
    %11 = vector.extract_strided_slice %6 {offsets = [0, 256], sizes = [8, 128], strides = [1, 1]} : vector<8x384xf32> to vector<8x128xf32>
    %c0_7 = arith.constant 0 : index
    %c0_8 = arith.constant 0 : index
    %c0_9 = arith.constant 0 : index
    %12 = vector.load %arg2[%c0_7, %c0_8, %c0_9] : memref<1x8x8xi8, #tpu.memory_space<vmem>>, vector<1x8x8xi8>
    %c0_i8 = arith.constant 0 : i8
    %13 = vector.broadcast %c0_i8 : i8 to vector<1x8x8xi8>
    %14 = arith.cmpi ne, %12, %13 : vector<1x8x8xi8>
    %15 = vector.extract_strided_slice %9 {offsets = [0, 0], sizes = [8, 32], strides = [1, 1]} : vector<8x128xf32> to vector<8x32xf32>
    %16 = vector.shape_cast %15 : vector<8x32xf32> to vector<1x8x32xf32>
    %17 = vector.extract_strided_slice %10 {offsets = [0, 0], sizes = [8, 32], strides = [1, 1]} : vector<8x128xf32> to vector<8x32xf32>
    %18 = vector.shape_cast %17 : vector<8x32xf32> to vector<1x8x32xf32>
    %19 = vector.extract_strided_slice %11 {offsets = [0, 0], sizes = [8, 32], strides = [1, 1]} : vector<8x128xf32> to vector<8x32xf32>
    %20 = vector.shape_cast %19 : vector<8x32xf32> to vector<1x8x32xf32>
    "tpu.trace_start"() <{level = 10 : i32, message = "bqd,bkd->bqk"}> : () -> ()
    %cst_10 = arith.constant dense<0.000000e+00> : vector<1x8x8xf32>
    %21 = tpu.matmul %16, %18, %cst_10 {dimension_numbers = #tpu.dot_dimension_numbers<[2], [2], [1], [1], [0, 0, 0, 1, 1, 1], [0], [0]>} : vector<1x8x32xf32>, vector<1x8x32xf32>, vector<1x8x8xf32> -> vector<1x8x8xf32>
    %cst_11 = arith.constant -3.000000e+38 : f32
    "tpu.trace_stop"() : () -> ()
    %22 = vector.broadcast %cst_11 : f32 to vector<1x8x8xf32>
    %23 = arith.select %14, %22, %21 : vector<1x8x8xi1>, vector<1x8x8xf32>
    %cst_12 = arith.constant dense<0xFF800000> : vector<1x8xf32>
    %24 = vector.multi_reduction <maximumf>, %23, %cst_12 [2] : vector<1x8x8xf32> to vector<1x8xf32>
    %25 = vector.shape_cast %24 : vector<1x8xf32> to vector<1x8x1xf32>
    %26 = vector.broadcast %25 : vector<1x8x1xf32> to vector<1x8x8xf32>
    %27 = arith.subf %23, %26 : vector<1x8x8xf32>
    %28 = math.exp %27 : vector<1x8x8xf32>
    %cst_13 = arith.constant dense<0.000000e+00> : vector<1x8xf32>
    %29 = vector.multi_reduction <add>, %28, %cst_13 [2] : vector<1x8x8xf32> to vector<1x8xf32>
    %30 = vector.shape_cast %29 : vector<1x8xf32> to vector<1x8x1xf32>
    %31 = tpu.reciprocal %30 : vector<1x8x1xf32> -> vector<1x8x1xf32>
    %32 = vector.broadcast %31 : vector<1x8x1xf32> to vector<1x8x8xf32>
    %33 = arith.mulf %28, %32 : vector<1x8x8xf32>
    "tpu.trace_start"() <{level = 10 : i32, message = "bqk,bkd->bqd"}> : () -> ()
    %cst_14 = arith.constant dense<0.000000e+00> : vector<1x8x32xf32>
    %34 = tpu.matmul %33, %20, %cst_14 {dimension_numbers = #tpu.dot_dimension_numbers<[2], [1], [1], [2], [0, 0, 0, 1, 1, 2], [0], [0]>} : vector<1x8x8xf32>, vector<1x8x32xf32>, vector<1x8x32xf32> -> vector<1x8x32xf32>
    "tpu.trace_stop"() : () -> ()
    %35 = vector.extract_strided_slice %9 {offsets = [0, 32], sizes = [8, 32], strides = [1, 1]} : vector<8x128xf32> to vector<8x32xf32>
    %36 = vector.shape_cast %35 : vector<8x32xf32> to vector<1x8x32xf32>
    %37 = vector.extract_strided_slice %10 {offsets = [0, 32], sizes = [8, 32], strides = [1, 1]} : vector<8x128xf32> to vector<8x32xf32>
    %38 = vector.shape_cast %37 : vector<8x32xf32> to vector<1x8x32xf32>
    %39 = vector.extract_strided_slice %11 {offsets = [0, 32], sizes = [8, 32], strides = [1, 1]} : vector<8x128xf32> to vector<8x32xf32>
    %40 = vector.shape_cast %39 : vector<8x32xf32> to vector<1x8x32xf32>
    "tpu.trace_start"() <{level = 10 : i32, message = "bqd,bkd->bqk"}> : () -> ()
    %cst_15 = arith.constant dense<0.000000e+00> : vector<1x8x8xf32>
    %41 = tpu.matmul %36, %38, %cst_15 {dimension_numbers = #tpu.dot_dimension_numbers<[2], [2], [1], [1], [0, 0, 0, 1, 1, 1], [0], [0]>} : vector<1x8x32xf32>, vector<1x8x32xf32>, vector<1x8x8xf32> -> vector<1x8x8xf32>
    %cst_16 = arith.constant -3.000000e+38 : f32
    "tpu.trace_stop"() : () -> ()
    %42 = vector.broadcast %cst_16 : f32 to vector<1x8x8xf32>
    %43 = arith.select %14, %42, %41 : vector<1x8x8xi1>, vector<1x8x8xf32>
    %cst_17 = arith.constant dense<0xFF800000> : vector<1x8xf32>
    %44 = vector.multi_reduction <maximumf>, %43, %cst_17 [2] : vector<1x8x8xf32> to vector<1x8xf32>
    %45 = vector.shape_cast %44 : vector<1x8xf32> to vector<1x8x1xf32>
    %46 = vector.broadcast %45 : vector<1x8x1xf32> to vector<1x8x8xf32>
    %47 = arith.subf %43, %46 : vector<1x8x8xf32>
    %48 = math.exp %47 : vector<1x8x8xf32>
    %cst_18 = arith.constant dense<0.000000e+00> : vector<1x8xf32>
    %49 = vector.multi_reduction <add>, %48, %cst_18 [2] : vector<1x8x8xf32> to vector<1x8xf32>
    %50 = vector.shape_cast %49 : vector<1x8xf32> to vector<1x8x1xf32>
    %51 = tpu.reciprocal %50 : vector<1x8x1xf32> -> vector<1x8x1xf32>
    %52 = vector.broadcast %51 : vector<1x8x1xf32> to vector<1x8x8xf32>
    %53 = arith.mulf %48, %52 : vector<1x8x8xf32>
    "tpu.trace_start"() <{level = 10 : i32, message = "bqk,bkd->bqd"}> : () -> ()
    %cst_19 = arith.constant dense<0.000000e+00> : vector<1x8x32xf32>
    %54 = tpu.matmul %53, %40, %cst_19 {dimension_numbers = #tpu.dot_dimension_numbers<[2], [1], [1], [2], [0, 0, 0, 1, 1, 2], [0], [0]>} : vector<1x8x8xf32>, vector<1x8x32xf32>, vector<1x8x32xf32> -> vector<1x8x32xf32>
    "tpu.trace_stop"() : () -> ()
    %55 = vector.extract_strided_slice %9 {offsets = [0, 64], sizes = [8, 32], strides = [1, 1]} : vector<8x128xf32> to vector<8x32xf32>
    %56 = vector.shape_cast %55 : vector<8x32xf32> to vector<1x8x32xf32>
    %57 = vector.extract_strided_slice %10 {offsets = [0, 64], sizes = [8, 32], strides = [1, 1]} : vector<8x128xf32> to vector<8x32xf32>
    %58 = vector.shape_cast %57 : vector<8x32xf32> to vector<1x8x32xf32>
    %59 = vector.extract_strided_slice %11 {offsets = [0, 64], sizes = [8, 32], strides = [1, 1]} : vector<8x128xf32> to vector<8x32xf32>
    %60 = vector.shape_cast %59 : vector<8x32xf32> to vector<1x8x32xf32>
    "tpu.trace_start"() <{level = 10 : i32, message = "bqd,bkd->bqk"}> : () -> ()
    %cst_20 = arith.constant dense<0.000000e+00> : vector<1x8x8xf32>
    %61 = tpu.matmul %56, %58, %cst_20 {dimension_numbers = #tpu.dot_dimension_numbers<[2], [2], [1], [1], [0, 0, 0, 1, 1, 1], [0], [0]>} : vector<1x8x32xf32>, vector<1x8x32xf32>, vector<1x8x8xf32> -> vector<1x8x8xf32>
    %cst_21 = arith.constant -3.000000e+38 : f32
    "tpu.trace_stop"() : () -> ()
    %62 = vector.broadcast %cst_21 : f32 to vector<1x8x8xf32>
    %63 = arith.select %14, %62, %61 : vector<1x8x8xi1>, vector<1x8x8xf32>
    %cst_22 = arith.constant dense<0xFF800000> : vector<1x8xf32>
    %64 = vector.multi_reduction <maximumf>, %63, %cst_22 [2] : vector<1x8x8xf32> to vector<1x8xf32>
    %65 = vector.shape_cast %64 : vector<1x8xf32> to vector<1x8x1xf32>
    %66 = vector.broadcast %65 : vector<1x8x1xf32> to vector<1x8x8xf32>
    %67 = arith.subf %63, %66 : vector<1x8x8xf32>
    %68 = math.exp %67 : vector<1x8x8xf32>
    %cst_23 = arith.constant dense<0.000000e+00> : vector<1x8xf32>
    %69 = vector.multi_reduction <add>, %68, %cst_23 [2] : vector<1x8x8xf32> to vector<1x8xf32>
    %70 = vector.shape_cast %69 : vector<1x8xf32> to vector<1x8x1xf32>
    %71 = tpu.reciprocal %70 : vector<1x8x1xf32> -> vector<1x8x1xf32>
    %72 = vector.broadcast %71 : vector<1x8x1xf32> to vector<1x8x8xf32>
    %73 = arith.mulf %68, %72 : vector<1x8x8xf32>
    "tpu.trace_start"() <{level = 10 : i32, message = "bqk,bkd->bqd"}> : () -> ()
    %cst_24 = arith.constant dense<0.000000e+00> : vector<1x8x32xf32>
    %74 = tpu.matmul %73, %60, %cst_24 {dimension_numbers = #tpu.dot_dimension_numbers<[2], [1], [1], [2], [0, 0, 0, 1, 1, 2], [0], [0]>} : vector<1x8x8xf32>, vector<1x8x32xf32>, vector<1x8x32xf32> -> vector<1x8x32xf32>
    "tpu.trace_stop"() : () -> ()
    %75 = vector.extract_strided_slice %9 {offsets = [0, 96], sizes = [8, 32], strides = [1, 1]} : vector<8x128xf32> to vector<8x32xf32>
    %76 = vector.shape_cast %75 : vector<8x32xf32> to vector<1x8x32xf32>
    %77 = vector.extract_strided_slice %10 {offsets = [0, 96], sizes = [8, 32], strides = [1, 1]} : vector<8x128xf32> to vector<8x32xf32>
    %78 = vector.shape_cast %77 : vector<8x32xf32> to vector<1x8x32xf32>
    %79 = vector.extract_strided_slice %11 {offsets = [0, 96], sizes = [8, 32], strides = [1, 1]} : vector<8x128xf32> to vector<8x32xf32>
    %80 = vector.shape_cast %79 : vector<8x32xf32> to vector<1x8x32xf32>
    "tpu.trace_start"() <{level = 10 : i32, message = "bqd,bkd->bqk"}> : () -> ()
    %cst_25 = arith.constant dense<0.000000e+00> : vector<1x8x8xf32>
    %81 = tpu.matmul %76, %78, %cst_25 {dimension_numbers = #tpu.dot_dimension_numbers<[2], [2], [1], [1], [0, 0, 0, 1, 1, 1], [0], [0]>} : vector<1x8x32xf32>, vector<1x8x32xf32>, vector<1x8x8xf32> -> vector<1x8x8xf32>
    %cst_26 = arith.constant -3.000000e+38 : f32
    "tpu.trace_stop"() : () -> ()
    %82 = vector.broadcast %cst_26 : f32 to vector<1x8x8xf32>
    %83 = arith.select %14, %82, %81 : vector<1x8x8xi1>, vector<1x8x8xf32>
    %cst_27 = arith.constant dense<0xFF800000> : vector<1x8xf32>
    %84 = vector.multi_reduction <maximumf>, %83, %cst_27 [2] : vector<1x8x8xf32> to vector<1x8xf32>
    %85 = vector.shape_cast %84 : vector<1x8xf32> to vector<1x8x1xf32>
    %86 = vector.broadcast %85 : vector<1x8x1xf32> to vector<1x8x8xf32>
    %87 = arith.subf %83, %86 : vector<1x8x8xf32>
    %88 = math.exp %87 : vector<1x8x8xf32>
    %cst_28 = arith.constant dense<0.000000e+00> : vector<1x8xf32>
    %89 = vector.multi_reduction <add>, %88, %cst_28 [2] : vector<1x8x8xf32> to vector<1x8xf32>
    %90 = vector.shape_cast %89 : vector<1x8xf32> to vector<1x8x1xf32>
    %91 = tpu.reciprocal %90 : vector<1x8x1xf32> -> vector<1x8x1xf32>
    %92 = vector.broadcast %91 : vector<1x8x1xf32> to vector<1x8x8xf32>
    %93 = arith.mulf %88, %92 : vector<1x8x8xf32>
    "tpu.trace_start"() <{level = 10 : i32, message = "bqk,bkd->bqd"}> : () -> ()
    %cst_29 = arith.constant dense<0.000000e+00> : vector<1x8x32xf32>
    %94 = tpu.matmul %93, %80, %cst_29 {dimension_numbers = #tpu.dot_dimension_numbers<[2], [1], [1], [2], [0, 0, 0, 1, 1, 2], [0], [0]>} : vector<1x8x8xf32>, vector<1x8x32xf32>, vector<1x8x32xf32> -> vector<1x8x32xf32>
    "tpu.trace_stop"() : () -> ()
    %95 = tpu.concatenate %34, %54, %74, %94 in 2 : vector<1x8x32xf32>, vector<1x8x32xf32>, vector<1x8x32xf32>, vector<1x8x32xf32> -> vector<1x8x128xf32>
    %96 = vector.shape_cast %95 : vector<1x8x128xf32> to vector<8x128xf32>
    %97 = arith.addf %1, %96 : vector<8x128xf32>
    %c0_30 = arith.constant 0 : index
    %c0_31 = arith.constant 0 : index
    %98 = vector.load %arg5[%c0_30, %c0_31] : memref<1x128xf32, #tpu.memory_space<vmem>>, vector<1x128xf32>
    %c0_32 = arith.constant 0 : index
    %c0_33 = arith.constant 0 : index
    %99 = vector.load %arg6[%c0_32, %c0_33] : memref<1x128xf32, #tpu.memory_space<vmem>>, vector<1x128xf32>
    %cst_34 = arith.constant dense<0.000000e+00> : vector<8xf32>
    %100 = vector.multi_reduction <add>, %97, %cst_34 [1] : vector<8x128xf32> to vector<8xf32>
    %101 = vector.shape_cast %100 : vector<8xf32> to vector<8x1xf32>
    %cst_35 = arith.constant 1.280000e+02 : f32
    %102 = vector.broadcast %cst_35 : f32 to vector<8x1xf32>
    %103 = arith.divf %101, %102 : vector<8x1xf32>
    %104 = vector.broadcast %103 : vector<8x1xf32> to vector<8x128xf32>
    %105 = arith.subf %97, %104 : vector<8x128xf32>
    %106 = arith.mulf %105, %105 : vector<8x128xf32>
    %cst_36 = arith.constant dense<0.000000e+00> : vector<8xf32>
    %107 = vector.multi_reduction <add>, %106, %cst_36 [1] : vector<8x128xf32> to vector<8xf32>
    %108 = vector.shape_cast %107 : vector<8xf32> to vector<8x1xf32>
    %cst_37 = arith.constant 1.280000e+02 : f32
    %109 = vector.broadcast %cst_37 : f32 to vector<8x1xf32>
    %110 = arith.divf %108, %109 : vector<8x1xf32>
    %cst_38 = arith.constant 9.99999974E-6 : f32
    %111 = vector.broadcast %cst_38 : f32 to vector<8x1xf32>
    %112 = arith.addf %110, %111 : vector<8x1xf32>
    %113 = math.rsqrt %112 : vector<8x1xf32>
    %114 = vector.broadcast %113 : vector<8x1xf32> to vector<8x128xf32>
    %115 = arith.mulf %105, %114 : vector<8x128xf32>
    %116 = vector.broadcast %98 : vector<1x128xf32> to vector<8x128xf32>
    %117 = arith.mulf %115, %116 : vector<8x128xf32>
    %118 = vector.broadcast %99 : vector<1x128xf32> to vector<8x128xf32>
    %119 = arith.addf %117, %118 : vector<8x128xf32>
    %c0_39 = arith.constant 0 : index
    %c0_40 = arith.constant 0 : index
    %120 = vector.load %arg7[%c0_39, %c0_40] : memref<128x128xf32, #tpu.memory_space<vmem>>, vector<128x128xf32>
    %cst_41 = arith.constant dense<0.000000e+00> : vector<8x128xf32>
    %121 = tpu.matmul %119, %120, %cst_41 {dimension_numbers = #tpu.dot_dimension_numbers<[1], [0], [0], [1], [0, 0, 1, 1], [], []>} : vector<8x128xf32>, vector<128x128xf32>, vector<8x128xf32> -> vector<8x128xf32>
    %c0_42 = arith.constant 0 : index
    %c0_43 = arith.constant 0 : index
    %122 = vector.load %arg8[%c0_42, %c0_43] : memref<1x128xf32, #tpu.memory_space<vmem>>, vector<1x128xf32>
    %123 = vector.broadcast %122 : vector<1x128xf32> to vector<8x128xf32>
    %124 = arith.addf %121, %123 : vector<8x128xf32>
    %cst_44 = arith.constant 0.000000e+00 : f32
    %125 = vector.broadcast %cst_44 : f32 to vector<8x128xf32>
    %126 = arith.maximumf %124, %125 : vector<8x128xf32>
    %c0_45 = arith.constant 0 : index
    %c0_46 = arith.constant 0 : index
    %127 = vector.load %arg9[%c0_45, %c0_46] : memref<128x128xf32, #tpu.memory_space<vmem>>, vector<128x128xf32>
    %cst_47 = arith.constant dense<0.000000e+00> : vector<8x128xf32>
    %128 = tpu.matmul %126, %127, %cst_47 {dimension_numbers = #tpu.dot_dimension_numbers<[1], [0], [0], [1], [0, 0, 1, 1], [], []>} : vector<8x128xf32>, vector<128x128xf32>, vector<8x128xf32> -> vector<8x128xf32>
    %c0_48 = arith.constant 0 : index
    %c0_49 = arith.constant 0 : index
    %129 = vector.load %arg10[%c0_48, %c0_49] : memref<1x128xf32, #tpu.memory_space<vmem>>, vector<1x128xf32>
    %130 = vector.broadcast %129 : vector<1x128xf32> to vector<8x128xf32>
    %131 = arith.addf %128, %130 : vector<8x128xf32>
    %132 = arith.addf %119, %131 : vector<8x128xf32>
    %c0_50 = arith.constant 0 : index
    %c0_51 = arith.constant 0 : index
    %133 = vector.load %arg11[%c0_50, %c0_51] : memref<1x128xf32, #tpu.memory_space<vmem>>, vector<1x128xf32>
    %c0_52 = arith.constant 0 : index
    %c0_53 = arith.constant 0 : index
    %134 = vector.load %arg12[%c0_52, %c0_53] : memref<1x128xf32, #tpu.memory_space<vmem>>, vector<1x128xf32>
    %cst_54 = arith.constant dense<0.000000e+00> : vector<8xf32>
    %135 = vector.multi_reduction <add>, %132, %cst_54 [1] : vector<8x128xf32> to vector<8xf32>
    %136 = vector.shape_cast %135 : vector<8xf32> to vector<8x1xf32>
    %cst_55 = arith.constant 1.280000e+02 : f32
    %137 = vector.broadcast %cst_55 : f32 to vector<8x1xf32>
    %138 = arith.divf %136, %137 : vector<8x1xf32>
    %139 = vector.broadcast %138 : vector<8x1xf32> to vector<8x128xf32>
    %140 = arith.subf %132, %139 : vector<8x128xf32>
    %141 = arith.mulf %140, %140 : vector<8x128xf32>
    %cst_56 = arith.constant dense<0.000000e+00> : vector<8xf32>
    %142 = vector.multi_reduction <add>, %141, %cst_56 [1] : vector<8x128xf32> to vector<8xf32>
    %143 = vector.shape_cast %142 : vector<8xf32> to vector<8x1xf32>
    %cst_57 = arith.constant 1.280000e+02 : f32
    %144 = vector.broadcast %cst_57 : f32 to vector<8x1xf32>
    %145 = arith.divf %143, %144 : vector<8x1xf32>
    %cst_58 = arith.constant 9.99999974E-6 : f32
    %146 = vector.broadcast %cst_58 : f32 to vector<8x1xf32>
    %147 = arith.addf %145, %146 : vector<8x1xf32>
    %148 = math.rsqrt %147 : vector<8x1xf32>
    %149 = vector.broadcast %148 : vector<8x1xf32> to vector<8x128xf32>
    %150 = arith.mulf %140, %149 : vector<8x128xf32>
    %151 = vector.broadcast %133 : vector<1x128xf32> to vector<8x128xf32>
    %152 = arith.mulf %150, %151 : vector<8x128xf32>
    %153 = vector.broadcast %134 : vector<1x128xf32> to vector<8x128xf32>
    %154 = arith.addf %152, %153 : vector<8x128xf32>
    %155 = vector.shape_cast %154 : vector<8x128xf32> to vector<1x8x128xf32>
    %c0_59 = arith.constant 0 : index
    %c0_60 = arith.constant 0 : index
    %c0_61 = arith.constant 0 : index
    %156 = vector.load %arg13[%c0_59, %c0_60, %c0_61] : memref<1x8x128xf32, #tpu.memory_space<vmem>>, vector<1x8x128xf32>
    tpu.vector_store %arg13[%c0_59, %c0_60, %c0_61], %155 {strides = array<i32>} : memref<1x8x128xf32, #tpu.memory_space<vmem>>, vector<1x8x128xf32>,
    return
  }
  func.func @transform_0(%arg0: i32) -> (i32, i32, i32) {
    %c0_i32 = arith.constant 0 : i32
    %c0_i32_0 = arith.constant 0 : i32
    %c0_i32_1 = arith.constant 0 : i32
    return %arg0, %c0_i32, %c0_i32_0 : i32, i32, i32
  }
  func.func @transform_1(%arg0: i32) -> (i32, i32, i32) {
    %c0_i32 = arith.constant 0 : i32
    %c0_i32_0 = arith.constant 0 : i32
    %c0_i32_1 = arith.constant 0 : i32
    return %arg0, %c0_i32, %c0_i32_0 : i32, i32, i32
  }
  func.func @transform_2(%arg0: i32) -> (i32, i32) {
    %c0_i32 = arith.constant 0 : i32
    %c0_i32_0 = arith.constant 0 : i32
    %c0_i32_1 = arith.constant 0 : i32
    return %c0_i32, %c0_i32_0 : i32, i32
  }
  func.func @transform_3(%arg0: i32) -> (i32, i32) {
    %c0_i32 = arith.constant 0 : i32
    %c0_i32_0 = arith.constant 0 : i32
    %c0_i32_1 = arith.constant 0 : i32
    return %c0_i32, %c0_i32_0 : i32, i32
  }
  func.func @transform_4(%arg0: i32) -> (i32, i32) {
    %c0_i32 = arith.constant 0 : i32
    %c0_i32_0 = arith.constant 0 : i32
    %c0_i32_1 = arith.constant 0 : i32
    return %c0_i32, %c0_i32_0 : i32, i32
  }
  func.func @transform_5(%arg0: i32) -> (i32, i32) {
    %c0_i32 = arith.constant 0 : i32
    %c0_i32_0 = arith.constant 0 : i32
    %c0_i32_1 = arith.constant 0 : i32
    return %c0_i32, %c0_i32_0 : i32, i32
  }
  func.func @transform_6(%arg0: i32) -> (i32, i32) {
    %c0_i32 = arith.constant 0 : i32
    %c0_i32_0 = arith.constant 0 : i32
    %c0_i32_1 = arith.constant 0 : i32
    return %c0_i32, %c0_i32_0 : i32, i32
  }
  func.func @transform_7(%arg0: i32) -> (i32, i32) {
    %c0_i32 = arith.constant 0 : i32
    %c0_i32_0 = arith.constant 0 : i32
    %c0_i32_1 = arith.constant 0 : i32
    return %c0_i32, %c0_i32_0 : i32, i32
  }
  func.func @transform_8(%arg0: i32) -> (i32, i32) {
    %c0_i32 = arith.constant 0 : i32
    %c0_i32_0 = arith.constant 0 : i32
    %c0_i32_1 = arith.constant 0 : i32
    return %c0_i32, %c0_i32_0 : i32, i32
  }
  func.func @transform_9(%arg0: i32) -> (i32, i32) {
    %c0_i32 = arith.constant 0 : i32
    %c0_i32_0 = arith.constant 0 : i32
    %c0_i32_1 = arith.constant 0 : i32
    return %c0_i32, %c0_i32_0 : i32, i32
  }
  func.func @transform_10(%arg0: i32) -> (i32, i32) {
    %c0_i32 = arith.constant 0 : i32
    %c0_i32_0 = arith.constant 0 : i32
    %c0_i32_1 = arith.constant 0 : i32
    return %c0_i32, %c0_i32_0 : i32, i32
  }
  func.func @transform_11(%arg0: i32) -> (i32, i32) {
    %c0_i32 = arith.constant 0 : i32
    %c0_i32_0 = arith.constant 0 : i32
    %c0_i32_1 = arith.constant 0 : i32
    return %c0_i32, %c0_i32_0 : i32, i32
  }
  func.func @transform_12(%arg0: i32) -> (i32, i32, i32) {
    %c0_i32 = arith.constant 0 : i32
    %c0_i32_0 = arith.constant 0 : i32
    %c0_i32_1 = arith.constant 0 : i32
    return %arg0, %c0_i32, %c0_i32_0 : i32, i32, i32
  }
}

</mosaic_0001>

<bundles_post_ra>
// kernel: tpu_custom_call.1
= control target key start
LH: loop header
LB: loop body
LE: loop exit
PB: predicated region body
PF: predicated region fallthrough
CT: control target
= control target key end

     0   :  { %s2998_s0 = inlined_call_operand.hbm [shape: f32[2,8,128], index: 0, kind: input, shape index: {}]   ;;  %s2999_s1 = inlined_call_operand.hbm [shape: s8[2,8,8], index: 1, kind: input, shape index: {}]   ;;  %s3000_s2 = inlined_call_operand.hbm [shape: f32[128,384], index: 2, kind: input, shape index: {}]   ;;  %s3001_s3 = inlined_call_operand.vmem [shape: f32[1,384], index: 3, kind: input, shape index: {}]   ;;  %s3002_s4 = inlined_call_operand.vmem [shape: f32[1,128], index: 4, kind: input, shape index: {}]   ;;  %s3003_s5 = inlined_call_operand.vmem [shape: f32[1,128], index: 5, kind: input, shape index: {}]   ;;  %s3004_s6 = inlined_call_operand.hbm [shape: f32[128,128], index: 6, kind: input, shape index: {}]   ;;  %s3005_s7 = inlined_call_operand.vmem [shape: f32[1,128], index: 7, kind: input, shape index: {}]   ;;  %s3006_s8 = inlined_call_operand.hbm [shape: f32[128,128], index: 8, kind: input, shape index: {}]   ;;  %s3007_s9 = inlined_call_operand.vmem [shape: f32[1,128], index: 9, kind: input, shape index: {}]   ;;  %s3008_s10 = inlined_call_operand.vmem [shape: f32[1,128], index: 10, kind: input, shape index: {}]   ;;  %s3009_s11 = inlined_call_operand.vmem [shape: f32[1,128], index: 11, kind: input, shape index: {}]   ;;  %s3010_s12 = inlined_call_operand.hbm [shape: f32[2,8,128], index: 12, kind: output, shape index: {}]  }
   0x1   :  { %3018 = sst [smem:[#allocation19_spill]] %s2998_s0 }
   0x2   :  { %3019 = sst [smem:[#allocation20_spill]] %s3000_s2 }
   0x3   :  { %3020 = sst [smem:[#allocation21_spill]] %s3007_s9 }
   0x4   :  { %3021 = sst [smem:[#allocation22_spill]] %s3008_s10 }
   0x5   :  { %3022 = sst [smem:[#allocation23_spill]] %s3009_s11 }
   0x6   :  { %3023 = sst [smem:[#allocation24_spill]] %s3010_s12 }
   0x7   :  { %17 = vsyncpa [#allocation3], 0 }
   0x8   :  { %19 = vsyncpa [#allocation3 + $0x1], 0 }
   0x9   :  { %20 = vsyncpa [#allocation6], 0 }
   0xa   :  { %22 = vsyncpa [#allocation6 + $0x1], 0 }
   0xb   :  { %23 = vsyncpa [#allocation9], 0 }
   0xc   :  { %24 = vsyncpa [#allocation4], 0 }
   0xd   :  { %26 = vsyncpa [#allocation4 + $0x1], 0  ;;  %s2557_s21 = smov 0   ;;  %s2559_s22 = smov 0  }
   0xe   :  { %s2561_s23 = smov 0   ;;  %s2563_s24 = smov 0  }
   0xf LB: > { %3024 = sst [smem:[#allocation17_spill]] %s2461_s21  ;;  %s2578_s25 = sadd.s32 4294967295, %s2473_s24   ;;  %s2473_s24 = sphi %s2563_s24, %s3056_s24   ;;  %s2469_s23 = sphi %s2561_s23, %s3055_s23   ;;  %s2465_s22 = sphi %s2559_s22, %s3054_s22   ;;  %s2461_s21 = sphi %s2557_s21, %s3053_s21  }
  0x10   : > { %s1783_s26 = sadd.s32 4294967294, %s2473_s24   ;;  %p52_p0 = scmp.ne.s32.totalorder %s2465_s22, %s2461_s21 }
  0x11   : > { %p3012_p1 = scmp.eq.s32.totalorder %s2578_s25, 0  ;;  %p318_p3 = scmp.eq.s32.totalorder %s1783_s26, 1 }
  0x12   : > { %p1784_p5 = scmp.ge.s32.totalorder %s2473_s24, 1  ;;  %p325_p7 = scmp.lt.s32.totalorder %s2473_s24, 3 }
  0x13   : > { %p2587_p4 = por %p3012_p1, %p52_p0  ;;  %p2592_p6 = por %p318_p3, %p52_p0 }
  0x14   : > { %p2597_p8 = pnand %p1784_p5, %p325_p7  ;;  %s2475_s30 = smov [#allocation7]  }
  0x15   : > { %s3025_s27 = scalar_select %p2587_p4, 1, 0 }
  0x16   : > { %s3026_s28 = scalar_select %p2592_p6, 1, 0 }
  0x17   : > { %s3028_s29 = scalar_select %p2597_p8, 1, 0 }
  0x18   : > { %3027 = sst [smem:[#allocation18_spill]] %s3026_s28  ;;  %s337_s13 = sshll.u32 %s2475_s30, 4  ;;  %s2601_s13 = int_to_ptr.vmem [resolvable:$true] %s337_s13 }
  0x19   : > { %p2156_p9 = pneg %p2597_p8  ;;  %s2476_s15 = smov [#allocation8]  }
  0x1a   : > { %s359_s16 = sshll.u32 %s2476_s15, 4  ;;  %s3030_s2 = sld [smem:[#allocation20_spill]]  ;;  %s2612_s16 = int_to_ptr.vmem [resolvable:$true] %s359_s16 }
  0x1b   : > { %p2608_p11 = pnand %p2156_p9, %p3012_p1 }
  0x1d   : > { %p2622_p13 = pneg %p2608_p11 }
  0x20   : > { %s2251_s19 = scalar_lea.hbm %s3030_s2, 6144 }
  0x21   : > { %p2252_p12 = scmp.ne.s32.totalorder %s3030_s2, %s2251_s19  ;;  %p2258_p5 = scmp.lt.u32.totalorder %s2251_s19, %s3030_s2 }
  0x23   : > { %p2254_p0 = pnand %p2622_p13, %p2252_p12 }
  0x25   : > { %p2255_p3 = pneg %p2254_p0 }
  0x27   : > { %p2260_p7 = pnand %p2258_p5, %p2255_p3 }
  0x29   : > { %2263 = shalt.err (!%p2260_p7)
}
  0x2a   : > { %s2264_s17 = scalar_lea.vmem %s2601_s13, 6144  ;;  %p2272_p2 = scmp.lt.s32.totalorder %s2601_s13, %s2601_s13 }
  0x2b   : > { %p2265_p9 = scmp.ne.s32.totalorder %s2601_s13, %s2264_s17  ;;  %p2273_p6 = scmp.lt.s32.totalorder %s2264_s17, %s2264_s17 }
  0x2d   : > { %p2267_p10 = pnand %p2265_p9, %p2622_p13  ;;  %p2274_p12 = por %p2273_p6, %p2272_p2 }
  0x2f   : > { %p2268_p1 = pneg %p2267_p10 }
  0x31   : > { %p2275_p0 = pnand %p2274_p12, %p2268_p1 }
  0x33   : > { %2278 = shalt.err (!%p2275_p0)
}
  0x34   : > { %s2477_s18 = smov 384   ;;  %s2478_s28 = smov 24  }
  0x35   : > { %2159 = dma.hbm_to_vmem [thread:$0]  (!%p2608_p11), %s3030_s2, 6144, %s2601_s13, [#allocation6], %s2477_s18, %s2477_s18, %s2478_s28  }
  0x36   : > { %s2279_s21 = scalar_lea.hbm %s3004_s6, 2048 }
  0x37   : > { %p2280_p2 = scmp.ne.s32.totalorder %s3004_s6, %s2279_s21  ;;  %p2286_p10 = scmp.lt.u32.totalorder %s2279_s21, %s3004_s6 }
  0x39   : > { %p2282_p1 = pnand %p2280_p2, %p2622_p13 }
  0x3b   : > { %p2283_p6 = pneg %p2282_p1 }
  0x3d   : > { %p2288_p3 = pnand %p2286_p10, %p2283_p6 }
  0x3f   : > { %2291 = shalt.err (!%p2288_p3)
}
  0x40   : > { %s2292_s13 = scalar_lea.vmem %s2612_s16, 2048  ;;  %p2300_p12 = scmp.lt.s32.totalorder %s2612_s16, %s2612_s16 }
  0x41   : > { %p2293_p5 = scmp.ne.s32.totalorder %s2612_s16, %s2292_s13  ;;  %p2301_p0 = scmp.lt.s32.totalorder %s2292_s13, %s2292_s13 }
  0x43   : > { %p2295_p7 = pnand %p2293_p5, %p2622_p13  ;;  %p2302_p2 = por %p2301_p0, %p2300_p12 }
  0x45   : > { %p2296_p9 = pneg %p2295_p7 }
  0x47   : > { %p2303_p1 = pnand %p2302_p2, %p2296_p9 }
  0x49   : > { %2306 = shalt.err (!%p2303_p1)
}
  0x4a   : > { %s2479_s11 = smov 128   ;;  %s2480_s10 = smov 8  }
  0x4b   : > { %2162 = dma.hbm_to_vmem [thread:$0]  (!%p2608_p11), %s3004_s6, 2048, %s2612_s16, [#allocation9], %s2479_s11, %s2479_s11, %s2480_s10  }
  0x4c   : > { %s2481_s18 = smov [#allocation10]   ;;  %s2667_s19 = sadd.s32 1, %s2473_s24  }
  0x4d   : > { %s375_s28 = sshll.u32 %s2481_s18, 4  ;;  %s2307_s15 = scalar_lea.hbm %s3006_s8, 2048  ;;  %s376_s28 = int_to_ptr.vmem [resolvable:$true] %s375_s28 }
  0x4e   : > { %p2308_p6 = scmp.ne.s32.totalorder %s3006_s8, %s2307_s15  ;;  %p2314_p5 = scmp.lt.u32.totalorder %s2307_s15, %s3006_s8 }
  0x50   : > { %p2310_p10 = pnand %p2308_p6, %p2622_p13 }
  0x52   : > { %p2311_p3 = pneg %p2310_p10 }
  0x54   : > { %p2316_p7 = pnand %p2314_p5, %p2311_p3 }
  0x56   : > { %2319 = shalt.err (!%p2316_p7)
}
  0x57   : > { %s2320_s16 = scalar_lea.vmem %s376_s28, 2048  ;;  %p2328_p2 = scmp.lt.s32.totalorder %s376_s28, %s376_s28 }
  0x58   : > { %p2321_p9 = scmp.ne.s32.totalorder %s376_s28, %s2320_s16  ;;  %p2329_p1 = scmp.lt.s32.totalorder %s2320_s16, %s2320_s16 }
  0x5a   : > { %p2323_p12 = pnand %p2321_p9, %p2622_p13  ;;  %p2330_p4 = por %p2329_p1, %p2328_p2 }
  0x5c   : > { %p2324_p0 = pneg %p2323_p12 }
  0x5e   : > { %p2331_p8 = pnand %p2330_p4, %p2324_p0 }
  0x60   : > { %2334 = shalt.err (!%p2331_p8)
}
  0x61   : > { %2165 = dma.hbm_to_vmem [thread:$0]  (!%p2608_p11), %s3006_s8, 2048, %s376_s28, [#allocation9], %s2479_s11, %s2479_s11, %s2480_s10  }
  0x62   : > { %s36_s2 = ssub.s32 %s2473_s24, %s2667_s19  ;;  %s39_s9 = sadd.s32 1, %s2469_s23 }
  0x63   : > { %p37_p4 = scmp.eq.s32.totalorder %s36_s2, 0  ;;  %p46_p8 = scmp.ne.s32.totalorder %s2469_s23, %s2465_s22 }
  0x64   : > { %p47_p13 = scmp.eq.s32.totalorder %s2473_s24, 0  ;;  %p2180_p6 = scmp.lt.s32.totalorder %s2473_s24, 2 }
  0x65   : > { %s2695_s14 = scalar_select %p37_p4, %s2469_s23, %s39_s9  }
  0x66   : > { %p48_p10 = por %p47_p13, %p46_p8  ;;  %p3032_p3 = scmp.eq.s32.totalorder %s2578_s25, 1 }
  0x67   : > { %s2704_s18 = sand.u32 1, %s2469_s23   ;;  %s1790_s11 = sshll.u32 %s2473_s24, 7 }
  0x68   : > { %p2699_p5 = por %p3032_p3, %p46_p8  ;;  %s1789_s10 = sshll.u32 %s2704_s18, 3 }
  0x69   : > { %s3034_s0 = sld [smem:[#allocation19_spill]]  ;;  %s402_s15 = scalar_lea.vmem [#allocation2], %s1789_s10 }
  0x6a   : > { %s3033_s30 = scalar_select %p2699_p5, 1, 0 }
  0x6b   : > { %s409_s17 = sshll.u32 %s402_s15, 4  ;;  %p2713_p11 = pnand %p2180_p6, %p48_p10  ;;  %s2717_s17 = int_to_ptr.vmem [resolvable:$true] %s409_s17 }
  0x6c   : > { %s416_s16 = sand.u32 1, %s2473_s24   ;;  %s399_s12 = scalar_lea.sflag [#allocation3], %s2704_s18 }
  0x6d   : > { %p2337_p9 = pneg %p2713_p11 }
  0x6f   : > { %s2711_s26 = scalar_lea.hbm %s3034_s0, %s1790_s11  ;;  %s2340_s11 = scalar_lea.hbm %s3034_s0, 256 }
  0x70   : > { %s2335_s21 = scalar_lea.hbm %s2711_s26, 128  ;;  %p2341_p2 = scmp.lt.u32.totalorder %s2711_s26, %s3034_s0 }
  0x71   : > { %p2336_p7 = scmp.ne.s32.totalorder %s2711_s26, %s2335_s21  ;;  %p2342_p1 = scmp.lt.u32.totalorder %s2340_s11, %s2335_s21 }
  0x72   : > { %p2344_p8 = scmp.lt.u32.totalorder %s2335_s21, %s2711_s26 }
  0x73   : > { %p2338_p12 = pnand %p2337_p9, %p2336_p7  ;;  %p2343_p4 = por %p2342_p1, %p2341_p2 }
  0x75   : > { %p2339_p0 = pneg %p2338_p12  ;;  %p2345_p13 = por %p2344_p8, %p2343_p4 }
  0x77   : > { %p2346_p6 = pnand %p2345_p13, %p2339_p0 }
  0x79   : > { %2349 = shalt.err (!%p2346_p6)
}
  0x7a   : > { %s2350_s20 = scalar_lea.vmem %s2717_s17, 128  ;;  %s2482_s15 = smov [#allocation2]  }
  0x7b   : > { %p2351_p10 = scmp.ne.s32.totalorder %s2717_s17, %s2350_s20  ;;  %s2355_s2 = sshll.u32 %s2482_s15, 4  ;;  %s2356_s2 = int_to_ptr.vmem [resolvable:$false] %s2355_s2 }
  0x7c   : > { %s2357_s9 = scalar_lea.vmem %s2356_s2, 256  ;;  %p2358_p12 = scmp.lt.s32.totalorder %s2717_s17, %s2356_s2 }
  0x7d   : > { %p2353_p3 = pnand %p2351_p10, %p2337_p9  ;;  %p2359_p2 = scmp.lt.s32.totalorder %s2357_s9, %s2350_s20 }
  0x7f   : > { %p2354_p7 = pneg %p2353_p3  ;;  %p2360_p1 = por %p2359_p2, %p2358_p12 }
  0x81   : > { %p2361_p4 = pnand %p2360_p1, %p2354_p7 }
  0x83   : > { %2364 = shalt.err (!%p2361_p4)
}
  0x84   : > { %2169 = dma.hbm_to_vmem [thread:$0]  (!%p2713_p11), %s2711_s26, 128, %s2717_s17, %s399_s12  }
  0x85   : > { %s1791_s21 = sshll.u32 %s2704_s18, 1  ;;  %s1792_s11 = sshll.u32 %s2473_s24, 5 }
  0x86   : > { %s2751_s15 = scalar_lea.hbm %s2999_s1, %s1792_s11  ;;  %s420_s20 = scalar_lea.vmem [#allocation5], %s1791_s21 }
  0x87   : > { %s427_s2 = sshll.u32 %s420_s20, 4  ;;  %s417_s9 = scalar_lea.sflag [#allocation6], %s416_s16  ;;  %s428_s2 = int_to_ptr.vmem [resolvable:$true] %s427_s2 }
  0x88   : > { %s2365_s0 = scalar_lea.hbm %s2751_s15, 32  ;;  %s2370_s17 = scalar_lea.hbm %s2999_s1, 64 }
  0x89   : > { %p2366_p0 = scmp.ne.s32.totalorder %s2751_s15, %s2365_s0  ;;  %p2371_p6 = scmp.lt.u32.totalorder %s2751_s15, %s2999_s1 }
  0x8a   : > { %p2372_p10 = scmp.lt.u32.totalorder %s2370_s17, %s2365_s0  ;;  %p2374_p7 = scmp.lt.u32.totalorder %s2365_s0, %s2751_s15 }
  0x8b   : > { %p2368_p8 = pnand %p2366_p0, %p2337_p9 }
  0x8c   : > { %p2373_p3 = por %p2372_p10, %p2371_p6 }
  0x8d   : > { %p2369_p13 = pneg %p2368_p8 }
  0x8e   : > { %p2375_p12 = por %p2374_p7, %p2373_p3 }
  0x90   : > { %p2376_p2 = pnand %p2375_p12, %p2369_p13 }
  0x92   : > { %2379 = shalt.err (!%p2376_p2)
}
  0x93   : > { %s2380_s16 = scalar_lea.vmem %s428_s2, 32  ;;  %s2483_s21 = smov [#allocation5]  }
  0x94   : > { %p2381_p1 = scmp.ne.s32.totalorder %s428_s2, %s2380_s16  ;;  %s2385_s10 = sshll.u32 %s2483_s21, 4  ;;  %s2386_s10 = int_to_ptr.vmem [resolvable:$false] %s2385_s10 }
  0x95   : > { %s2387_s28 = scalar_lea.vmem %s2386_s10, 64  ;;  %p2388_p8 = scmp.lt.s32.totalorder %s428_s2, %s2386_s10 }
  0x96   : > { %p2383_p4 = pnand %p2381_p1, %p2337_p9  ;;  %p2389_p5 = scmp.lt.s32.totalorder %s2387_s28, %s2380_s16 }
  0x98   : > { %p2384_p0 = pneg %p2383_p4  ;;  %p2390_p6 = por %p2389_p5, %p2388_p8 }
  0x9a   : > { %p2391_p10 = pnand %p2390_p6, %p2384_p0 }
  0x9c   : > { %2394 = shalt.err (!%p2391_p10)
}
  0x9d   : > { %2172 = dma.hbm_to_vmem [thread:$0]  (!%p2713_p11), %s2751_s15, 32, %s428_s2, %s417_s9  }
  0x9e   : > { %p3036_p13 = scmp.ne.s32.totalorder %s3028_s29, 0 }
  0x9f   : > { %s2777_s0 = sand.u32 (!%p3036_p13), 1, %s2465_s22   ;;  %p3037_p5 = scmp.ne.s32.totalorder (!%p3036_p13), %s3025_s27, 0 }
  0xa0   : > { %436 = sbr.rel (%p3036_p13) target bundleno = 2481 (0x9b1), region = 68  ;;  %s1794_s20 = sshll.u32 (!%p3036_p13), %s2777_s0, 3 }
  0xa1   : > { %s439_s18 = scalar_lea.sflag (!%p3036_p13), [#allocation3], %s2777_s0  ;;  %s2783_s26 = scalar_lea.vmem (!%p3036_p13), [#allocation2], %s1794_s20 }
  0xa7   : > { %2440 = dma.done.wait (%p3037_p5), %s439_s18, 128  }
  0xa8   : > { %2442 = vsyncadd (%p3037_p5), %s439_s18, 4294967168  ;;  %s447_s29 = sand.u32 1, %s2578_s25   ;;  %s1795_s13 = sshll.u32 %s2777_s0, 1 }
  0xa9   : > { %s448_s15 = scalar_lea.sflag [#allocation6], %s447_s29  ;;  %s2791_s2 = scalar_lea.vmem [#allocation5], %s1795_s13 }
  0xaa   : > { %2444 = dma.done.wait (%p3037_p5), %s448_s15, 32  }
  0xab   : > { %2446 = vsyncadd (%p3037_p5), %s448_s15, 4294967264  ;;  %p3038_p11 = scmp.eq.s32.totalorder %s2578_s25, 0 }
  0xad   : > { %2448 = dma.done.wait (%p3038_p11), [#allocation6], 6144   ;;  %p3039_p9 = pmov %p3038_p11 }
  0xaf   : > { %2450 = vsyncadd (%p3039_p9), [#allocation6], 4294961152  ;;  %p3040_p3 = pmov %p3039_p9 }
  0xb1   : > { %2452 = dma.done.wait (%p3040_p3), [#allocation9], 4096   ;;  %p3041_p7 = pmov %p3040_p3 }
  0xb2   : > { %v2484_v0 = vmov 0.0   ;;  %v513_v1 = vld [vmem:[#allocation7 + $0x8] sm:$0xff]  ;;  %v516_v2 = vld [vmem:[#allocation7 + $0x20] sm:$0xff]  ;;  %v515_v5 = vld [vmem:[#allocation7 + $0x18] sm:$0xff]  ;;  %vm2485_vm0 = vmmov 0   ;;  %v2486_v53 = vmov 0.0|0.0   ;;  %v562_v60 = vlaneseq }
  0xb3   : > { %2454 = vsyncadd (%p3041_p7), [#allocation9], 4294963200  ;;  %641 = vmatprep.mubr.f32.mxu0 %v2484_v0  ;;  %v512_v3 = vld [vmem:[#allocation7] sm:$0xff]  ;;  %v2034_v4 = vpack.c.bf16 %v516_v2, %v513_v1  ;;  %v519_v6 = vld [vmem:[#allocation7 + $0x38] sm:$0xff]  ;;  %1921 = vmatprep.mubr.msk.f32.mxu1 %vm2485_vm0, %v2484_v0  ;;  %vm721_vm1 = vcmask 261120   ;;  %s2487_s17 = smov 64  }
  0xb4   : > { %v522_v7 = vld [vmem:[#allocation7 + $0x50] sm:$0xff]  ;;  %v2036_v8 = vpack.c.bf16 %v515_v5, %v512_v3  ;;  %v521_v11 = vld [vmem:[#allocation7 + $0x48] sm:$0xff]  ;;  %v528_v13 = vld [vmem:[#allocation7 + $0x80] sm:$0xff]  ;;  %2066 = vmatprep.subr.bf16.mxu1 %v2486_v53  ;;  %v2819_v61 = vshrl.u32 %v562_v60, 7  ;;  %s2488_s12 = smov 96   ;;  %s2489_s11 = smov 32  }
  0xb5   : > { %v2038_v9 = vpack.c.bf16 %v522_v7, %v519_v6  ;;  %v518_v10 = vld [vmem:[#allocation7 + $0x30] sm:$0xff]  ;;  %v525_v12 = vld [vmem:[#allocation7 + $0x68] sm:$0xff]  ;;  %2035 = vmatprep.subr.bf16.mxu0 %v2034_v4  ;;  %v524_v16 = vld [vmem:[#allocation7 + $0x60] sm:$0xff]  ;;  %vm802_vm4 = vcmask 64512   ;;  %vm1399_vm5 = vcmask 523264   ;;  %vm1401_vm6 = vcmask 785408  }
  0xb6   : > { %2037 = vmatpush1.bf16.msra.mxu0 %v2036_v8  ;;  %v2040_v14 = vpack.c.bf16 %v521_v11, %v518_v10  ;;  %v2042_v15 = vpack.c.bf16 %v528_v13, %v525_v12  ;;  %v527_v17 = vld [vmem:[#allocation7 + $0x78] sm:$0xff]  ;;  %v534_v19 = vld [vmem:[#allocation7 + $0xb0] sm:$0xff]  ;;  %v533_v23 = vld [vmem:[#allocation7 + $0xa8] sm:$0xff]  ;;  %v564_v2 = vsub.s32 0, %v2819_v61  ;;  %v568_v3 = vsub.s32 1, %v2819_v61  ;;  %s3044_s15 = sld [smem:[#allocation21_spill]] }
  0xb7   : > { %2039 = vmatprep.subr.bf16.mxu0 %v2038_v9  ;;  %v531_v18 = vld [vmem:[#allocation7 + $0x98] sm:$0xff]  ;;  %v2044_v20 = vpack.c.bf16 %v527_v17, %v524_v16  ;;  %v530_v22 = vld [vmem:[#allocation7 + $0x90] sm:$0xff]  ;;  %v537_v24 = vld [vmem:[#allocation7 + $0xc8] sm:$0xff]  ;;  %s3045_s9 = sld [smem:[#allocation22_spill]]  ;;  %s1819_s16 = sshll.u32 %s2578_s25, 7 }
  0xb8   : > { %v2046_v21 = vpack.c.bf16 %v534_v19, %v531_v18  ;;  %v540_v25 = vld [vmem:[#allocation7 + $0xe0] sm:$0xff]  ;;  %v2048_v26 = vpack.c.bf16 %v533_v23, %v530_v22  ;;  %v539_v29 = vld [vmem:[#allocation7 + $0xd8] sm:$0xff]  ;;  %v546_v31 = vld [vmem:[#allocation7 + $0x110] sm:$0xff]  ;;  %s508_s21 = scalar_lea.vmem [#allocation11], %s1794_s20  ;;  %s1649_s13 = scalar_lea.sflag [#allocation4], %s2777_s0 }
  0xb9   : > { %v2050_v27 = vpack.c.bf16 %v540_v25, %v537_v24  ;;  %v536_v28 = vld [vmem:[#allocation7 + $0xc0] sm:$0xff]  ;;  %v543_v30 = vld [vmem:[#allocation7 + $0xf8] sm:$0xff]  ;;  %v542_v34 = vld [vmem:[#allocation7 + $0xf0] sm:$0xff]  ;;  %s1662_s10 = sshll.u32 %s508_s21, 4  ;;  %p3048_p2 = scmp.ne.s32.totalorder %s3033_s30, 0  ;;  %s2956_s10 = int_to_ptr.vmem [resolvable:$true] %s1662_s10 }
  0xba   : > { %2041 = vmatpush1.bf16.msra.mxu0 %v2040_v14  ;;  %v2052_v32 = vpack.c.bf16 %v539_v29, %v536_v28  ;;  %v2054_v33 = vpack.c.bf16 %v546_v31, %v543_v30  ;;  %v545_v35 = vld [vmem:[#allocation7 + $0x108] sm:$0xff]  ;;  %v552_v37 = vld [vmem:[#allocation7 + $0x140] sm:$0xff]  ;;  %v551_v41 = vld [vmem:[#allocation7 + $0x138] sm:$0xff]  ;;  %v2490_v31 = vmov 0   ;;  %s2491_s25 = smov [#allocation11]  }
  0xbb   : > { %2043 = vmatprep.subr.bf16.mxu0 %v2042_v15  ;;  %v549_v36 = vld [vmem:[#allocation7 + $0x128] sm:$0xff]  ;;  %v2056_v38 = vpack.c.bf16 %v545_v35, %v542_v34  ;;  %v548_v40 = vld [vmem:[#allocation7 + $0x120] sm:$0xff]  ;;  %v555_v42 = vld [vmem:[#allocation7 + $0x158] sm:$0xff]  ;;  %v572_v35 = vsub.s32 2, %v2819_v61  ;;  %s2399_s20 = sshll.u32 %s2491_s25, 4  ;;  %s2400_s20 = int_to_ptr.vmem [resolvable:$false] %s2399_s20 }
  0xbc   : > { %v2058_v39 = vpack.c.bf16 %v552_v37, %v549_v36  ;;  %v558_v43 = vld [vmem:[#allocation7 + $0x170] sm:$0xff]  ;;  %v2060_v44 = vpack.c.bf16 %v551_v41, %v548_v40  ;;  %v557_v47 = vld [vmem:[#allocation7 + $0x168] sm:$0xff]  ;;  %v520_v52 = vld [vmem:[#allocation7 + $0x40] sm:$0xff]  ;;  %p2402_p0 = scmp.lt.s32.totalorder %s2956_s10, %s2400_s20 }
  0xbd   : > { %v2062_v45 = vpack.c.bf16 %v558_v43, %v555_v42  ;;  %v554_v46 = vld [vmem:[#allocation7 + $0x150] sm:$0xff]  ;;  %v517_v51 = vld [vmem:[#allocation7 + $0x28] sm:$0xff]  ;;  %v523_v55 = vld [vmem:[#allocation7 + $0x58] sm:$0xff] }
  0xbe   : > { %2045 = vmatpush1.bf16.msra.mxu0 %v2044_v20  ;;  %v2064_v48 = vpack.c.bf16 %v557_v47, %v554_v46  ;;  %v2807_v49 = vld [vmem:[%s2783_s26] sm:$0xff]  ;;  %v2070_v56 = vpack.c.bf16 %v523_v55, %v520_v52  ;;  %v532_v62 = vld [vmem:[#allocation7 + $0xa0] sm:$0xff]  ;;  %v719_v30 = vld [vmem:[%s2791_s2] sm:$0x3]  ;;  %s3047_s26 = sld [smem:[#allocation24_spill]]  ;;  %s2401_s2 = scalar_lea.vmem %s2400_s20, 256 }
  0xbf   : > { %2047 = vmatprep.subr.bf16.mxu0 %v2046_v21  ;;  %v514_v50 = vld [vmem:[#allocation7 + $0x10] sm:$0xff]  ;;  %v529_v58 = vld [vmem:[#allocation7 + $0x88] sm:$0xff]  ;;  %v535_v63 = vld [vmem:[#allocation7 + $0xb8] sm:$0xff]  ;;  %vm720_vm2 = vnez %v719_v30 }
  0xc0   : > { %v2067_v54 = vpack.c.bf16 %v517_v51, %v514_v50  ;;  %v526_v57 = vld [vmem:[#allocation7 + $0x70] sm:$0xff]  ;;  %v2076_v1 = vpack.c.bf16 %v535_v63, %v532_v62  ;;  %v2826_v4 = vld [vmem:[%s3001_s3] sm:$0x7]  ;;  %v544_v11 = vld [vmem:[#allocation7 + $0x100] sm:$0xff] }
  0xc1   : > { %v2073_v59 = vpack.c.bf16 %v529_v58, %v526_v57  ;;  %v538_v5 = vld [vmem:[#allocation7 + $0xd0] sm:$0xff]  ;;  %v541_v6 = vld [vmem:[#allocation7 + $0xe8] sm:$0xff]  ;;  %v565_v8 = vrot.slane %v2826_v4, %v564_v2  ;;  %v569_v9 = vrot.slane %v2826_v4, %v568_v3  ;;  %v547_v12 = vld [vmem:[#allocation7 + $0x118] sm:$0xff]  ;;  %v573_v40 = vrot.slane %v2826_v4, %v572_v35 }
  0xc2   : > { %2049 = vmatpush1.bf16.msra.mxu0 %v2048_v26  ;;  %2068 = vmatpush3.bf16.msra.mxu1 %v2067_v54  ;;  %v2079_v7 = vpack.c.bf16 %v541_v6, %v538_v5  ;;  %v2082_v14 = vpack.c.bf16 %v547_v12, %v544_v11  ;;  %v550_v17 = vld [vmem:[#allocation7 + $0x130] sm:$0xff]  ;;  %v553_v18 = vld [vmem:[#allocation7 + $0x148] sm:$0xff]  ;;  %v556_v19 = vld [vmem:[#allocation7 + $0x160] sm:$0xff] }
  0xc3   : > { %2051 = vmatprep.subr.bf16.mxu0 %v2050_v27  ;;  %2069 = vmatprep.subr.bf16.mxu1 %v2486_v53  ;;  %v2085_v20 = vpack.c.bf16 %v553_v18, %v550_v17  ;;  %v559_v21 = vld [vmem:[#allocation7 + $0x178] sm:$0xff] }
  0xc4   : > { %v2088_v23 = vpack.c.bf16 %v559_v21, %v556_v19  ;;  %s2954_s29 = scalar_lea.hbm %s3047_s26, %s1819_s16 }
  0xc6   : > { %2053 = vmatpush1.bf16.msra.mxu0 %v2052_v32  ;;  %2071 = vmatpush3.bf16.msra.mxu1 %v2070_v56  ;;  %v798_v32 = vsel %vm720_vm2, 16843009, %v2490_v31 }
  0xc7   : > { %2055 = vmatprep.subr.bf16.mxu0 %v2054_v33  ;;  %2072 = vmatprep.subr.bf16.mxu1 %v2486_v53  ;;  %v799_v33 = vunpack.c.0.s8 %v798_v32 }
  0xc9   : > { %vm2865_vm3 = vcmp.ne.s32.totalorder %v799_v33, 0 }
  0xca   : > { %2057 = vmatpush1.bf16.msra.mxu0 %v2056_v38  ;;  %2074 = vmatpush3.bf16.msra.mxu1 %v2073_v59 }
  0xcb   : > { %2059 = vmatprep.subr.bf16.mxu0 %v2058_v39  ;;  %2075 = vmatprep.subr.bf16.mxu1 %v2486_v53 }
  0xce   : > { %2061 = vmatpush1.bf16.msra.mxu0 %v2060_v44  ;;  %2077 = vmatpush3.bf16.msra.mxu1 %v2076_v1 }
  0xcf   : > { %2063 = vmatprep.subr.bf16.mxu0 %v2062_v45  ;;  %2078 = vmatprep.subr.bf16.mxu1 %v2486_v53 }
  0xd2   : > { %2065 = vmatpush1.bf16.msra.mxu0 %v2064_v48  ;;  %2080 = vmatpush3.bf16.msra.mxu1 %v2079_v7 }
  0xd3   : > { %1924 = vmatprep.subr.mxu0 %v2484_v0  ;;  %2081 = vmatprep.subr.bf16.mxu1 %v2486_v53 }
  0xd5   : > { %642 = vmatmul.mubr.f32.vlgmr.msra.gmra.mrb[0].mxu0 %v2807_v49 }
  0xd6   : > { %1926 = vmatprep.mubr.msk.f32.mxu0 %vm2485_vm0, %v2484_v0  ;;  %2083 = vmatpush3.bf16.msra.mxu1 %v2082_v14 }
  0xd7   : > { %2084 = vmatprep.subr.bf16.mxu1 %v2486_v53 }
  0xda   : > { %2086 = vmatpush3.bf16.msra.mxu1 %v2085_v20 }
  0xdb   : > { %2087 = vmatprep.subr.bf16.mxu1 %v2486_v53 }
  0xde   : > { %2089 = vmatpush3.bf16.msra.mxu1 %v2088_v23 }
  0xdf   : > { %1929 = vmatprep.subr.mxu1 %v2484_v0 }
  0xe1   : > { %1922 = vmatmul.mubr.f32.vlgmr.msra.gmra.mrb[0].mxu1 %v2807_v49 }
  0xe2   : > { %1931 = vmatprep.mubr.msk.f32.mxu1 %vm2485_vm0, %v2484_v0 }
 0x1a8   : > { %v643_v10 = vpop.f32.mrb[0].mxu0 }
 0x1a9   : > { %v645_v13 = vpop.f32.mrb[1].mxu0  ;;  %v644_v15 = vadd.f32 %v643_v10, %v565_v8 }
 0x1aa   : > { %v646_v16 = vadd.f32 %v645_v13, %v569_v9 }
 0x1ab   : > { %v718_v22 = vmul.f32 0.17677669, %v644_v15 }
 0x1ac   : > { %1056 = vrot.lane.b32.xlu1 %v646_v16, %s2487_s17  ;;  %889 = vrot.lane.b32.xlu0 %v646_v16, %s2488_s12 }
 0x1ad   : > { %1925 = vmatpush3.xpose.msk.msra.mxu0 %vm721_vm1, %v646_v16 }
 0x1ae   : > { %1934 = vmatprep.subr.mxu0 %v2484_v0 }
 0x1b0   : > { %1927 = vmatmul.mubr.msk.f32.vlgmr.msra.gmra.mrb[2].mxu0 %vm721_vm1, %v718_v22  ;;  %1054 = vrot.lane.b32.xlu1 %v718_v22, %s2487_s17 }
 0x1b1   : > { %887 = vrot.lane.b32.xlu0 %v718_v22, %s2488_s12  ;;  %1936 = vmatprep.mubr.msk.f32.mxu0 %vm2485_vm0, %v2484_v0 }
 0x1b4   : > { %1220 = vrot.lane.b32.xlu1 %v718_v22, %s2489_s11  ;;  %v714_v41 = vpop.f32.mrb[0].mxu1 }
 0x1b5   : > { %1222 = vrot.lane.b32.xlu0 %v646_v16, %s2489_s11  ;;  %v715_v42 = vadd.f32 %v714_v41, %v573_v40  ;;  %v1923_v43 = vpop.f32.mrb[1].mxu1 }
 0x1b7   : > { %1930 = vmatpush3.msra.mxu1 %v715_v42 }
 0x1b8   : > { %1939 = vmatprep.subr.mxu1 %v2484_v0 }
 0x21e   : > { %v890_v24 = vpop.permute.xlu0 %889  ;;  %v1057_v25 = vpop.permute.xlu1 %1056 }
 0x21f   : > { %1935 = vmatpush3.xpose.msk.msra.mxu0 %vm721_vm1, %v890_v24 }
 0x220   : > { %1944 = vmatprep.subr.mxu0 %v2484_v0 }
 0x222   : > { %v1055_v27 = vpop.permute.xlu1 %1054 }
 0x223   : > { %v888_v26 = vpop.permute.xlu0 %887 }
 0x224   : > { %1937 = vmatmul.mubr.msk.f32.vlgmr.msra.gmra.mrb[4].mxu0 %vm721_vm1, %v888_v26 }
 0x225   : > { %1945 = vmatpush3.xpose.msk.msra.mxu0 %vm721_vm1, %v1057_v25  ;;  %1946 = vmatprep.mubr.msk.f32.mxu0 %vm2485_vm0, %v2484_v0 }
 0x226   : > { %1954 = vmatprep.subr.mxu0 %v2484_v0  ;;  %v1221_v29 = vpop.permute.xlu1 %1220 }
 0x227   : > { %v1223_v28 = vpop.permute.xlu0 %1222 }
 0x228   : > { %1947 = vmatmul.mubr.msk.f32.vlgmr.msra.gmra.mrb[6].mxu0 %vm721_vm1, %v1055_v27 }
 0x229   : > { %1955 = vmatpush3.xpose.msk.msra.mxu0 %vm721_vm1, %v1223_v28  ;;  %1956 = vmatprep.mubr.msk.f32.mxu0 %vm2485_vm0, %v2484_v0 }
 0x22a   : > { %2090 = vmatprep.subr.bf16.mxu0 %v2486_v53 }
 0x22c   : > { %1957 = vmatmul.mubr.msk.f32.vlgmr.msra.gmra.mrb[8].mxu0 %vm721_vm1, %v1221_v29 }
 0x22d   : > { %1996 = vmatprep.mubr.msk.f32.mxu0 %vm2485_vm0, %v2484_v0 }
 0x283   : > { %v794_v36 = vpop.f32.mrb[2].mxu0 }
 0x284   : > { %v801_v37 = vsel %vm2865_vm3, -3e+38, %v794_v36  ;;  %v1928_v38 = vpop.f32.mrb[3].mxu0 }
 0x285   : > { %v803_v39 = vsel %vm802_vm4, %v801_v37, -inf }
 0x286   : > { %804 = vmax.xlane.f32.xlu0 %v803_v39 }
 0x2f7   : > { %v961_v44 = vpop.f32.mrb[4].mxu0 }
 0x2f8   : > { %v965_v45 = vsel %vm2865_vm3, -3e+38, %v961_v44  ;;  %v1938_v46 = vpop.f32.mrb[5].mxu0  ;;  %v1432_v44 = vld [vmem:[#allocation8] sm:$0xff] }
 0x2f9   : > { %v966_v47 = vsel %vm802_vm4, %v965_v45, -inf  ;;  %v1434_v46 = vld [vmem:[#allocation8 + $0x10] sm:$0xff] }
 0x2fa   : > { %967 = vmax.xlane.f32.xlu1 %v966_v47 }
 0x2fb   : > { %v1128_v48 = vpop.f32.mrb[6].mxu0 }
 0x2fc   : > { %v1132_v50 = vsel %vm2865_vm3, -3e+38, %v1128_v48  ;;  %v1948_v51 = vpop.f32.mrb[7].mxu0  ;;  %v1435_v48 = vld [vmem:[#allocation8 + $0x18] sm:$0xff] }
 0x2fd   : > { %v1133_v52 = vsel %vm802_vm4, %v1132_v50, -inf  ;;  %v1436_v51 = vld [vmem:[#allocation8 + $0x20] sm:$0xff] }
 0x2fe   : > { %1134 = vmax.xlane.f32.xlu0 %v1133_v52  ;;  %v1437_v52 = vld [vmem:[#allocation8 + $0x28] sm:$0xff] }
 0x2ff   : > { %v1294_v54 = vpop.f32.mrb[8].mxu0 }
 0x300   : > { %v1298_v55 = vsel %vm2865_vm3, -3e+38, %v1294_v54  ;;  %v1958_v56 = vpop.f32.mrb[9].mxu0  ;;  %v2097_v54 = vpack.c.bf16 %v1437_v52, %v1436_v51 }
 0x301   : > { %v1299_v57 = vsel %vm802_vm4, %v1298_v55, -inf }
 0x302   : > { %1300 = vmax.xlane.f32.xlu0 %v1299_v57 }
 0x30b   : > { %978 = vrot.lane.b32.xlu1 %v715_v42, %s2488_s12 }
 0x313   : > { %v805_v58 = vpop.xlane.xlu0 %804 }
 0x314   : > { %v806_v59 = vsub.f32 %v801_v37, %v805_v58  ;;  %v1438_v58 = vld [vmem:[#allocation8 + $0x30] sm:$0xff] }
 0x316   : > { %v807_v60 = vmul.f32 1.442695, %v806_v59  ;;  %v1439_v59 = vld [vmem:[#allocation8 + $0x38] sm:$0xff] }
 0x318   : > { %2231 = vpow2.f32 %v807_v60  ;;  %v2100_v60 = vpack.c.bf16 %v1439_v59, %v1438_v58 }
 0x322   : > { %v2232_v61 = vpop.eup %2231 }
 0x323   : > { %v809_v62 = vsel %vm802_vm4, %v2232_v61, 0.0 }
 0x32f   : > { %810 = vadd.xlane.f32.xlu1 %v809_v62  ;;  %v1441_v62 = vld [vmem:[#allocation8 + $0x48] sm:$0xff] }
 0x387   : > { %v968_v63 = vpop.xlane.xlu1 %967 }
 0x388   : > { %v969_v1 = vsub.f32 %v965_v45, %v968_v63  ;;  %v1433_v45 = vld [vmem:[#allocation8 + $0x8] sm:$0xff]  ;;  %v1442_v63 = vld [vmem:[#allocation8 + $0x50] sm:$0xff] }
 0x389   : > { %v2091_v47 = vpack.c.bf16 %v1433_v45, %v1432_v44 }
 0x38a   : > { %v970_v2 = vmul.f32 1.442695, %v969_v1 }
 0x38b   : > { %v1135_v3 = vpop.xlane.xlu0 %1134  ;;  %v979_v15 = vpop.permute.xlu1 %978  ;;  %2092 = vmatpush3.bf16.msra.mxu0 %v2091_v47 }
 0x38c   : > { %2233 = vpow2.f32 %v970_v2  ;;  %v1136_v4 = vsub.f32 %v1132_v50, %v1135_v3  ;;  %v2094_v50 = vpack.c.bf16 %v1435_v48, %v1434_v46  ;;  %2093 = vmatprep.subr.bf16.mxu0 %v2486_v53  ;;  %v1443_v2 = vld [vmem:[#allocation8 + $0x58] sm:$0xff]  ;;  %v1815_v46 = vld [vmem:[%s3044_s15] ss:$0 sm:$0xff]  ;;  %s2395_s15 = scalar_lea.vmem %s2956_s10, 128 }
 0x38d   : > { %v2106_v3 = vpack.c.bf16 %v1443_v2, %v1442_v63  ;;  %p2396_p12 = scmp.ne.s32.totalorder %s2956_s10, %s2395_s15  ;;  %p2403_p8 = scmp.lt.s32.totalorder %s2401_s2, %s2395_s15 }
 0x38e   : > { %v1137_v5 = vmul.f32 1.442695, %v1136_v4  ;;  %v1444_v4 = vld [vmem:[#allocation8 + $0x60] sm:$0xff] }
 0x38f   : > { %v1301_v6 = vpop.xlane.xlu0 %1300  ;;  %2095 = vmatpush3.bf16.msra.mxu0 %v2094_v50  ;;  %p2397_p1 = pnand %p2396_p12, %p3048_p2  ;;  %p2404_p6 = por %p2403_p8, %p2402_p0 }
 0x390   : > { %2235 = vpow2.f32 %v1137_v5  ;;  %v1302_v7 = vsub.f32 %v1298_v55, %v1301_v6  ;;  %2096 = vmatprep.subr.bf16.mxu0 %v2486_v53  ;;  %v1445_v5 = vld [vmem:[#allocation8 + $0x68] sm:$0xff] }
 0x391   : > { %v2109_v6 = vpack.c.bf16 %v1445_v5, %v1444_v4  ;;  %p2398_p4 = pneg %p2397_p1 }
 0x392   : > { %v1303_v8 = vmul.f32 1.442695, %v1302_v7  ;;  %v1446_v7 = vld [vmem:[#allocation8 + $0x70] sm:$0xff] }
 0x393   : > { %2098 = vmatpush3.bf16.msra.mxu0 %v2097_v54  ;;  %p2405_p10 = pnand %p2404_p6, %p2398_p4 }
 0x394   : > { %2237 = vpow2.f32 %v1303_v8  ;;  %2099 = vmatprep.subr.bf16.mxu0 %v2486_v53  ;;  %v1447_v8 = vld [vmem:[#allocation8 + $0x78] sm:$0xff] }
 0x396   : > { %v2234_v9 = vpop.eup %2233 }
 0x397   : > { %v972_v10 = vsel %vm802_vm4, %v2234_v9, 0.0  ;;  %2101 = vmatpush3.bf16.msra.mxu0 %v2100_v60  ;;  %v1816_v60 = vld [vmem:[%s3045_s9] ss:$0 sm:$0xff] }
 0x398   : > { %973 = vadd.xlane.f32.xlu0 %v972_v10  ;;  %2102 = vmatprep.subr.bf16.mxu0 %v2486_v53  ;;  %v1526_v10 = vld [vmem:[#allocation10] sm:$0xff] }
 0x39a   : > { %v2236_v11 = vpop.eup %2235 }
 0x39b   : > { %v1139_v12 = vsel %vm802_vm4, %v2236_v11, 0.0 }
 0x39c   : > { %1140 = vadd.xlane.f32.xlu1 %v1139_v12  ;;  %v1528_v12 = vld [vmem:[#allocation10 + $0x10] sm:$0xff] }
 0x39e   : > { %v2238_v13 = vpop.eup %2237 }
 0x39f   : > { %v1305_v14 = vsel %vm802_vm4, %v2238_v13, 0.0 }
 0x3a0   : > { %1306 = vadd.xlane.f32.xlu0 %v1305_v14  ;;  %v1529_v14 = vld [vmem:[#allocation10 + $0x18] sm:$0xff] }
 0x3ad   : > { %1310 = vrot.lane.b32.xlu1 %v715_v42, %s2489_s11 }
 0x3b6   : > { %1144 = vrot.lane.b32.xlu0 %v715_v42, %s2487_s17 }
 0x3bc   : > { %v811_v16 = vpop.xlane.xlu1 %810 }
 0x3bd   : > { %2239 = vrcp.f32 %v811_v16  ;;  %v1530_v16 = vld [vmem:[#allocation10 + $0x20] sm:$0xff] }
 0x3c7   : > { %v2240_v17 = vpop.eup %2239 }
 0x3c8   : > { %v813_v18 = vmul.f32 %v2240_v17, %v2232_v61  ;;  %v1440_v61 = vld [vmem:[#allocation8 + $0x40] sm:$0xff]  ;;  %v1531_v17 = vld [vmem:[#allocation10 + $0x28] sm:$0xff] }
 0x3c9   : > { %v2103_v1 = vpack.c.bf16 %v1441_v62, %v1440_v61 }
 0x3ca   : > { %1932 = vmatmul.mubr.msk.f32.vlgmr.msra.gmra.mrb[2].mxu1 %vm802_vm4, %v813_v18  ;;  %v2121_v18 = vpack.c.bf16 %v1531_v17, %v1530_v16 }
 0x3cb   : > { %1940 = vmatpush3.msra.mxu1 %v979_v15  ;;  %1941 = vmatprep.mubr.msk.f32.mxu1 %vm2485_vm0, %v2484_v0  ;;  %v2118_v15 = vpack.c.bf16 %v1529_v14, %v1528_v12 }
 0x3cc   : > { %1949 = vmatprep.subr.mxu1 %v2484_v0  ;;  %2104 = vmatpush3.bf16.msra.mxu0 %v2103_v1 }
 0x3cd   : > { %2105 = vmatprep.subr.bf16.mxu0 %v2486_v53 }
 0x3d0   : > { %2107 = vmatpush3.bf16.msra.mxu0 %v2106_v3 }
 0x3d1   : > { %2108 = vmatprep.subr.bf16.mxu0 %v2486_v53 }
 0x3d4   : > { %2110 = vmatpush3.bf16.msra.mxu0 %v2109_v6 }
 0x3d5   : > { %2111 = vmatprep.subr.bf16.mxu0 %v2486_v53 }
 0x425   : > { %v974_v19 = vpop.xlane.xlu0 %973 }
 0x426   : > { %2241 = vrcp.f32 %v974_v19  ;;  %v1532_v19 = vld [vmem:[#allocation10 + $0x30] sm:$0xff] }
 0x429   : > { %v1141_v20 = vpop.xlane.xlu1 %1140 }
 0x42a   : > { %2243 = vrcp.f32 %v1141_v20  ;;  %v1533_v20 = vld [vmem:[#allocation10 + $0x38] sm:$0xff] }
 0x42d   : > { %v1307_v21 = vpop.xlane.xlu0 %1306  ;;  %v1311_v27 = vpop.permute.xlu1 %1310 }
 0x42e   : > { %2245 = vrcp.f32 %v1307_v21  ;;  %v2124_v21 = vpack.c.bf16 %v1533_v20, %v1532_v19 }
 0x430   : > { %v2242_v22 = vpop.eup %2241 }
 0x431   : > { %v976_v23 = vmul.f32 %v2242_v22, %v2234_v9  ;;  %v1145_v24 = vpop.permute.xlu0 %1144  ;;  %v2112_v9 = vpack.c.bf16 %v1447_v8, %v1446_v7  ;;  %v1534_v22 = vld [vmem:[#allocation10 + $0x40] sm:$0xff] }
 0x433   : > { %1942 = vmatmul.mubr.msk.f32.vlgmr.msra.gmra.mrb[4].mxu1 %vm802_vm4, %v976_v23  ;;  %2113 = vmatpush3.bf16.msra.mxu0 %v2112_v9  ;;  %v1535_v23 = vld [vmem:[#allocation10 + $0x48] sm:$0xff] }
 0x434   : > { %v2244_v25 = vpop.eup %2243  ;;  %1950 = vmatpush3.msra.mxu1 %v1145_v24  ;;  %1951 = vmatprep.mubr.msk.f32.mxu1 %vm2485_vm0, %v2484_v0  ;;  %v2127_v24 = vpack.c.bf16 %v1535_v23, %v1534_v22 }
 0x435   : > { %v1143_v26 = vmul.f32 %v2244_v25, %v2236_v11  ;;  %1959 = vmatprep.subr.mxu1 %v2484_v0  ;;  %v1527_v11 = vld [vmem:[#allocation10 + $0x8] sm:$0xff]  ;;  %v1536_v25 = vld [vmem:[#allocation10 + $0x50] sm:$0xff] }
 0x437   : > { %1952 = vmatmul.mubr.msk.f32.vlgmr.msra.gmra.mrb[6].mxu1 %vm802_vm4, %v1143_v26  ;;  %v1537_v26 = vld [vmem:[#allocation10 + $0x58] sm:$0xff] }
 0x438   : > { %v2246_v28 = vpop.eup %2245  ;;  %1960 = vmatpush3.msra.mxu1 %v1311_v27  ;;  %1961 = vmatprep.mubr.msk.f32.mxu1 %vm2485_vm0, %v2484_v0  ;;  %v2130_v27 = vpack.c.bf16 %v1537_v26, %v1536_v25 }
 0x439   : > { %v1309_v29 = vmul.f32 %v2246_v28, %v2238_v13  ;;  %2114 = vmatprep.subr.bf16.mxu1 %v2486_v53  ;;  %v2115_v13 = vpack.c.bf16 %v1527_v11, %v1526_v10  ;;  %v1538_v28 = vld [vmem:[#allocation10 + $0x60] sm:$0xff] }
 0x43b   : > { %1962 = vmatmul.mubr.msk.f32.vlgmr.msra.gmra.mrb[8].mxu1 %vm802_vm4, %v1309_v29  ;;  %v1539_v29 = vld [vmem:[#allocation10 + $0x68] sm:$0xff] }
 0x43c   : > { %2031 = vmatprep.mubr.msk.f32.mxu1 %vm2485_vm0, %v2484_v0  ;;  %2116 = vmatpush3.bf16.msra.mxu1 %v2115_v13 }
 0x43d   : > { %2117 = vmatprep.subr.bf16.mxu1 %v2486_v53 }
 0x440   : > { %2119 = vmatpush3.bf16.msra.mxu1 %v2118_v15 }
 0x441   : > { %2120 = vmatprep.subr.bf16.mxu1 %v2486_v53 }
 0x444   : > { %2122 = vmatpush3.bf16.msra.mxu1 %v2121_v18 }
 0x445   : > { %2123 = vmatprep.subr.bf16.mxu1 %v2486_v53 }
 0x448   : > { %2125 = vmatpush3.bf16.msra.mxu1 %v2124_v21 }
 0x449   : > { %2126 = vmatprep.subr.bf16.mxu1 %v2486_v53 }
 0x44c   : > { %2128 = vmatpush3.bf16.msra.mxu1 %v2127_v24 }
 0x44d   : > { %2129 = vmatprep.subr.bf16.mxu1 %v2486_v53 }
 0x450   : > { %2131 = vmatpush3.bf16.msra.mxu1 %v2130_v27 }
 0x451   : > { %2132 = vmatprep.subr.bf16.mxu1 %v2486_v53 }
 0x49d   : > { %v883_v30 = vpop.f32.mrb[2].mxu1 }
 0x49e   : > { %v1933_v31 = vpop.f32.mrb[3].mxu1 }
 0x506   : > { %v1050_v32 = vpop.f32.mrb[4].mxu1 }
 0x507   : > { %1387 = vrot.lane.b32.xlu1 %v1050_v32, %s2489_s11  ;;  %v1943_v33 = vpop.f32.mrb[5].mxu1  ;;  %s3046_s11 = sld [smem:[#allocation23_spill]] }
 0x50a   : > { %v1216_v34 = vpop.f32.mrb[6].mxu1 }
 0x50b   : > { %1391 = vrot.lane.b32.xlu0 %v1216_v34, %s2487_s17  ;;  %v1953_v35 = vpop.f32.mrb[7].mxu1 }
 0x50c   : > { %v1812_v35 = vld [vmem:[%s3002_s4] ss:$0 sm:$0xff] }
 0x50d   : > { %v1817_v62 = vld [vmem:[%s3046_s11] ss:$0 sm:$0xff] }
 0x50e   : > { %v1382_v36 = vpop.f32.mrb[8].mxu1 }
 0x50f   : > { %1395 = vrot.lane.b32.xlu1 %v1382_v36, %s2488_s12  ;;  %v1963_v37 = vpop.f32.mrb[9].mxu1 }
 0x510   : > { %v1813_v37 = vld [vmem:[%s3003_s5] ss:$0 sm:$0xff] }
 0x579   : > { %v1388_v38 = vpop.permute.xlu1 %1387 }
 0x57a   : > { %v1398_v0 = vsel %vm721_vm1, %v883_v30, %v1388_v38  ;;  %v2133_v30 = vpack.c.bf16 %v1539_v29, %v1538_v28 }
 0x57c   : > { %2134 = vmatpush3.bf16.msra.mxu1 %v2133_v30 }
 0x57d   : > { %v1392_v39 = vpop.permute.xlu0 %1391  ;;  %2135 = vmatprep.subr.bf16.mxu1 %v2486_v53  ;;  %v1541_v53 = vld [vmem:[#allocation10 + $0x78] sm:$0xff] }
 0x57e   : > { %v1400_v40 = vsel %vm1399_vm5, %v1398_v0, %v1392_v39  ;;  %v1540_v0 = vld [vmem:[#allocation10 + $0x70] sm:$0xff] }
 0x581   : > { %v1396_v41 = vpop.permute.xlu1 %1395 }
 0x582   : > { %v1402_v42 = vsel %vm1401_vm6, %v1400_v40, %v1396_v41  ;;  %v2136_v40 = vpack.c.bf16 %v1541_v53, %v1540_v0  ;;  %v1814_v41 = vld [vmem:[%s3005_s7] ss:$0 sm:$0xff] }
 0x583   : > { %v1403_v43 = vadd.f32 %v1402_v42, %v2807_v49 }
 0x584   : > { %2137 = vmatpush3.bf16.msra.mxu1 %v2136_v40 }
 0x585   : > { %1406 = vadd.xlane.f32.xlu0 %v1403_v43 }
 0x612   : > { %v1407_v49 = vpop.xlane.xlu0 %1406 }
 0x613   : > { %v1409_v55 = vmul.f32 0.0078125, %v1407_v49 }
 0x615   : > { %v2914_v56 = vsub.f32 %v1403_v43, %v1409_v55 }
 0x617   : > { %v1411_v57 = vmul.f32 %v2914_v56, %v2914_v56 }
 0x619   : > { %1412 = vadd.xlane.f32.xlu1 %v1411_v57 }
 0x6a6   : > { %v1413_v31 = vpop.xlane.xlu1 %1412 }
 0x6a7   : > { %v1414_v32 = vmul.f32 0.0078125, %v1413_v31 }
 0x6a9   : > { %v1415_v33 = vadd.f32 1e-05, %v1414_v32 }
 0x6ab   : > { %2247 = vrsqrt.f32 %v1415_v33 }
 0x6b5   : > { %v2248_v34 = vpop.eup %2247 }
 0x6b6   : > { %v1417_v36 = vmul.f32 %v2248_v34, %v2914_v56 }
 0x6b8   : > { %v1424_v38 = vmul.f32 %v1812_v35, %v1417_v36 }
 0x6ba   : > { %v1431_v39 = vadd.f32 %v1813_v37, %v1424_v38 }
 0x6bc   : > { %1997 = vmatmul.mubr.f32.vlgmr.msra.gmra.mrb[10].mxu0 %v1431_v39 }
 0x78f   : > { %v1521_v42 = vpop.f32.mrb[10].mxu0 }
 0x790   : > { %v1522_v43 = vadd.f32 %v1814_v41, %v1521_v42  ;;  %v1998_v44 = vpop.f32.mrb[11].mxu0 }
 0x792   : > { %v1525_v45 = vmax.f32 %v1522_v43, 0.0 }
 0x794   : > { %2032 = vmatmul.mubr.f32.vlgmr.msra.gmra.mrb[10].mxu1 %v1525_v45 }
 0x867   : > { %v1615_v47 = vpop.f32.mrb[10].mxu1 }
 0x868   : > { %v1616_v48 = vadd.f32 %v1815_v46, %v1615_v47  ;;  %v2033_v50 = vpop.f32.mrb[11].mxu1 }
 0x86a   : > { %v1619_v51 = vadd.f32 %v1616_v48, %v1431_v39 }
 0x86c   : > { %1622 = vadd.xlane.f32.xlu0 %v1619_v51 }
 0x8f9   : > { %v1623_v52 = vpop.xlane.xlu0 %1622 }
 0x8fa   : > { %v1624_v54 = vmul.f32 0.0078125, %v1623_v52 }
 0x8fc   : > { %v1625_v49 = vsub.f32 %v1619_v51, %v1624_v54 }
 0x8fe   : > { %v1626_v55 = vmul.f32 %v1625_v49, %v1625_v49 }
 0x900   : > { %1627 = vadd.xlane.f32.xlu0 %v1626_v55 }
 0x98d   : > { %v1628_v56 = vpop.xlane.xlu0 %1627 }
 0x98e   : > { %v1629_v57 = vmul.f32 0.0078125, %v1628_v56 }
 0x990   : > { %v1630_v58 = vadd.f32 1e-05, %v1629_v57 }
 0x992   : > { %2249 = vrsqrt.f32 %v1630_v58 }
 0x99c   : > { %v2250_v59 = vpop.eup %2249 }
 0x99d   : > { %v1632_v61 = vmul.f32 %v2250_v59, %v1625_v49 }
 0x99f   : > { %v1639_v63 = vmul.f32 %v1816_v60, %v1632_v61 }
 0x9a1   : > { %v1646_v1 = vadd.f32 %v1817_v62, %v1639_v63 }
 0x9a3   : > { %1647 = vst [vmem:[%s508_s21] sm:$0xff] %v1646_v1 }
 0x9a4   : > { %2408 = shalt.err (!%p2405_p10)
}
 0x9a5   : > { %s2409_s0 = scalar_lea.hbm %s2954_s29, 128  ;;  %s2413_s17 = scalar_lea.hbm %s3047_s26, 256 }
 0x9a6   : > { %p2410_p13 = scmp.ne.s32.totalorder %s2954_s29, %s2409_s0  ;;  %p2414_p9 = scmp.lt.u32.totalorder %s2954_s29, %s3047_s26 }
 0x9a7   : > { %p2415_p3 = scmp.lt.u32.totalorder %s2413_s17, %s2409_s0  ;;  %p2417_p12 = scmp.lt.u32.totalorder %s2409_s0, %s2954_s29 }
 0x9a8   : > { %p2411_p5 = pnand %p2410_p13, %p3048_p2 }
 0x9a9   : > { %p2416_p7 = por %p2415_p3, %p2414_p9 }
 0x9aa   : > { %p2412_p11 = pneg %p2411_p5 }
 0x9ab   : > { %p2418_p1 = por %p2417_p12, %p2416_p7 }
 0x9ad   : > { %p2419_p4 = pnand %p2418_p1, %p2412_p11 }
 0x9af   : > { %2422 = shalt.err (!%p2419_p4)
}
 0x9b0   : > { %2154 = dma.vmem_to_hbm [thread:$0]  (%p3048_p2), %s2956_s10, 128, %s2954_s29, %s1649_s13  }
 0x9b1 PF: > { %s3049_s16 = sld [smem:[#allocation17_spill]]  ;;  %s3050_s21 = sld [smem:[#allocation18_spill]] }
 0x9b2   : > { %p3052_p8 = scmp.ge.s32.totalorder %s2473_s24, 2 }
 0x9b7   : > { %s1674_s28 = sand.u32 1, %s3049_s16   ;;  %p3051_p0 = scmp.ne.s32.totalorder %s3050_s21, 0 }
 0x9b8   : > { %s1675_s18 = scalar_lea.sflag [#allocation4], %s1674_s28 }
 0x9b9   : > { %p2174_p6 = pnand %p3052_p8, %p3051_p0 }
 0x9bb   : > { %2456 = dma.done.wait (!%p2174_p6), %s1675_s18, 128  }
 0x9bc   : > { %2458 = vsyncadd (!%p2174_p6), %s1675_s18, 4294967168  ;;  %p29_p10 = scmp.ge.s32.totalorder %s2667_s19, 4   ;;  %s3053_s21 = smov %s2465_s22 }
 0x9bd   : > { %s3054_s22 = smov %s2469_s23  ;;  %s3055_s23 = smov %s2695_s14 }
 0x9be   : > { %s3056_s24 = smov %s2667_s19  ;;  %31 = sbr.rel (!%p29_p10) target bundleno = 15 (0xf), region = 138 }
 0x9c5   :  { %1680 = vsyncpa [#allocation3], 1 }
 0x9c6   :  { %1682 = vsyncpa [#allocation3 + $0x1], 1 }
 0x9c7   :  { %1683 = vsyncpa [#allocation6], 1 }
 0x9c8   :  { %1685 = vsyncpa [#allocation6 + $0x1], 1 }
 0x9c9   :  { %1686 = vsyncpa [#allocation9], 1 }
 0x9ca   :  { %1687 = vsyncpa [#allocation4], 1 }
 0x9cb   :  { %1689 = vsyncpa [#allocation4 + $0x1], 1 }

</bundles_post_ra>
